<compile_context>
chip_gen: v6e
topology: v6e:2x2x1
jax: 0.10.0
libtpu: 0.0.40
codegen_flags: <defaults>
</compile_context>

<pallas_src>
import jax
import jax.numpy as jnp
from jax import lax
from jax.experimental import pallas as pl
from jax.experimental.pallas import tpu as pltpu

# ------------------------- model hyper-parameters (small) -------------------------
B = 2                        # batch
SEQ = 8                      # input sequence length
M = 2                        # num_mem_tokens
T = SEQ + 2 * M              # logical sequence length inside the model (12)
TP = 16                      # padded sequence length (multiple of 8 sublanes)
D = 32                       # d_model
H = 2                        # attention heads
HD = D // H                  # head dim (16)
V = 64                       # vocab size
VP = 128                     # padded vocab (lane-dense logits)
N_POS_ORIG = 16              # original positional table
N_POS = N_POS_ORIG + 2 * M   # after wrap_positional_embeddings
L = 2                        # number of transformer layers
NEG = -1e30
BLK = TP - 8                 # start row of the aligned newmem writeback block


def _layernorm(x, g, b, eps=1e-5):
    mu = jnp.mean(x, axis=-1, keepdims=True)
    xc = x - mu
    var = jnp.mean(xc * xc, axis=-1, keepdims=True)
    return xc * lax.rsqrt(var + eps) * g + b


# ------------------------- fused forward kernel -------------------------
def fwd_kernel(h0_ref, bias_ref, mem_ref,
               ln1g_ref, ln1b_ref,
               wqkv_ref, bqkv_ref, wo_ref, bo_ref,
               ln2g_ref, ln2b_ref,
               wfc_ref, bfc_ref, wpr_ref, bpr_ref,
               lnfg_ref, lnfb_ref, wteT_ref,
               logits_ref, newmem_ref):
    h = h0_ref[...]            # (B, TP, D)   rows [T:TP] are zero padding
    bias = bias_ref[...]       # (B, TP, TP)  fused causal + key mask (built in wrapper)

    # Row mask for the memory-token overwrite, built once before the layer loop.
    rows = lax.broadcasted_iota(jnp.int32, (B, TP, D), 1)
    mem_mask = jnp.logical_or(rows < M,
                              jnp.logical_and(rows >= T - M, rows < T))   # (B, TP, D)

    scale = 1.0 / (HD ** 0.5)

    for li in range(L):
        # ParallelLayerWrapper: overwrite read [0:M] and write [T-M:T] memory rows
        # with prev_mem_tokens (pre-scattered slab + vselect, pure VPU).
        h = jnp.where(mem_mask, mem_ref[li], h)

        # ---- attention (pre-LN), fused QKV projection ----
        x2 = _layernorm(h, ln1g_ref[li], ln1b_ref[li]).reshape(B * TP, D)
        qkv = (jnp.dot(x2, wqkv_ref[li], preferred_element_type=jnp.float32)
               + bqkv_ref[li])                                            # (B*TP, 3D)

        ctx_parts = []
        for hh in range(H):
            qh = qkv[:, 0 * D + hh * HD:0 * D + (hh + 1) * HD].reshape(B, TP, HD)
            kh = qkv[:, 1 * D + hh * HD:1 * D + (hh + 1) * HD].reshape(B, TP, HD)
            vh = qkv[:, 2 * D + hh * HD:2 * D + (hh + 1) * HD].reshape(B, TP, HD)
            s = jnp.einsum('bqd,bkd->bqk', qh, kh,
                           preferred_element_type=jnp.float32) * scale + bias
            s = s - jnp.max(s, axis=-1, keepdims=True)
            p = jnp.exp(s)
            p = p * pl.reciprocal(jnp.sum(p, axis=-1, keepdims=True), approx=True)
            ctx_parts.append(jnp.einsum('bqk,bkd->bqd', p, vh,
                                        preferred_element_type=jnp.float32))
        # concat heads along lanes (2 x 16 -> 32, one lane tile), single full-width W_o
        ctx = jnp.concatenate(ctx_parts, axis=-1).reshape(B * TP, D)
        attn_out = jnp.dot(ctx, wo_ref[li],
                           preferred_element_type=jnp.float32) + bo_ref[li]
        h = h + attn_out.reshape(B, TP, D)

        # ---- MLP (pre-LN) ----
        x2 = _layernorm(h, ln2g_ref[li], ln2b_ref[li]).reshape(B * TP, D)
        ff = jnp.dot(x2, wfc_ref[li], preferred_element_type=jnp.float32) + bfc_ref[li]
        ff = jax.nn.gelu(ff, approximate=True)
        ff = jnp.dot(ff, wpr_ref[li], preferred_element_type=jnp.float32) + bpr_ref[li]
        h = h + ff.reshape(B, TP, D)

        # ParallelLayerWrapper.update_mem: write a sublane-aligned 8-row block;
        # the wrapper slices out rows [T-M:T] (block-local [2:4]).
        newmem_ref[li] = h[:, BLK:TP, :]

    # ---- final LayerNorm + tied LM head (wte pre-transposed, vocab-padded) ----
    hf = _layernorm(h, lnfg_ref[...], lnfb_ref[...]).reshape(B * TP, D)
    logits_ref[...] = jnp.dot(hf, wteT_ref[...], preferred_element_type=jnp.float32)


_VMEM = pl.BlockSpec(memory_space=pltpu.MemorySpace.VMEM)


def run_forward(h0, bias, mem_slab, p):
    # NOTE: all-resident VMEM design is fine at this <1 MiB working set on all
    # generations; if D/L/V/SEQ are scaled up, add a grid axis over L with
    # per-layer weight BlockSpecs instead of raising vmem_limit_bytes.
    return pl.pallas_call(
        fwd_kernel,
        out_shape=(jax.ShapeDtypeStruct((B * TP, VP), jnp.float32),
                   jax.ShapeDtypeStruct((L, B, 8, D), jnp.float32)),
        in_specs=[_VMEM] * 18,
        out_specs=(_VMEM, _VMEM),
    )(h0, bias, mem_slab,
      p['ln1_g'], p['ln1_b'],
      p['w_qkv'], p['b_qkv'], p['w_o'], p['b_o'],
      p['ln2_g'], p['ln2_b'],
      p['w_fc'], p['b_fc'], p['w_pr'], p['b_pr'],
      p['lnf_g'], p['lnf_b'], p['wteT'])


# ------------------------- parameter init (deterministic, synthetic) -------------------------
def init_params(key):
    keys = jax.random.split(key, 10)
    it = iter(keys)
    nk = lambda: next(it)
    wte = 0.02 * jax.random.normal(nk(), (V, D), jnp.float32)
    wpe = 0.02 * jax.random.normal(nk(), (N_POS, D), jnp.float32)     # already wrapped to N_POS

    w_qkv = 0.02 * jax.random.normal(nk(), (L, D, 3 * D), jnp.float32)   # fused QKV
    w_o = 0.02 * jax.random.normal(nk(), (L, D, D), jnp.float32)
    w_fc = 0.02 * jax.random.normal(nk(), (L, D, 4 * D), jnp.float32)
    w_pr = 0.02 * jax.random.normal(nk(), (L, 4 * D, D), jnp.float32)

    # Tied LM head: pre-transpose and pad vocab to VP lanes (lane-dense logits slab).
    wteT = jnp.zeros((D, VP), jnp.float32).at[:, :V].set(wte.T)

    # ParallelLayerWrapper.create_memory -> randn(1, M, D) per layer; zero_mem clones it.
    prev_mems = jax.random.normal(nk(), (L, 1, M, D), jnp.float32)
    # MemoryCell.create_memory -> randn(M, D) * embeddings.weight.std()
    cell_memory = jax.random.normal(nk(), (M, D), jnp.float32) * jnp.std(wte)

    params = dict(
        wte=wte, wpe=wpe, wteT=wteT, cell_memory=cell_memory,
        w_qkv=w_qkv, b_qkv=jnp.zeros((L, 1, 3 * D), jnp.float32),
        w_o=w_o, b_o=jnp.zeros((L, 1, D), jnp.float32),
        w_fc=w_fc, b_fc=jnp.zeros((L, 1, 4 * D), jnp.float32),
        w_pr=w_pr, b_pr=jnp.zeros((L, 1, D), jnp.float32),
        ln1_g=jnp.ones((L, 1, D), jnp.float32), ln1_b=jnp.zeros((L, 1, D), jnp.float32),
        ln2_g=jnp.ones((L, 1, D), jnp.float32), ln2_b=jnp.zeros((L, 1, D), jnp.float32),
        lnf_g=jnp.ones((1, D), jnp.float32), lnf_b=jnp.zeros((1, D), jnp.float32),
    )
    return params, prev_mems


# ------------------------- MemoryCell.forward (functional) -------------------------
def memory_cell_forward(params, prev_mems, input_ids,
                        attention_mask=None, labels=None, labels_mask=None):
    # ---- process_input ----
    memory_state = jnp.broadcast_to(params['cell_memory'][None], (B, M, D))
    inputs_embeds = params['wte'][input_ids]                               # (B, SEQ, D)
    emb = jnp.concatenate([memory_state, inputs_embeds, memory_state], axis=1)   # (B, T, D)

    # wrap_pos position ids: [0 .. seq+M-1] ++ [N_POS-M .. N_POS-1]
    position_ids = jnp.concatenate([jnp.arange(0, SEQ + M),
                                    jnp.arange(N_POS - M, N_POS)])
    h = emb + params['wpe'][position_ids][None]                            # (B, T, D)
    h0 = jnp.zeros((B, TP, D), jnp.float32).at[:, :T, :].set(h)            # pad T -> TP

    # pad_attention_mask: ones(B, T) with middle set to user mask; pad keys T..TP masked.
    mask = jnp.zeros((B, TP), jnp.int32).at[:, :T].set(1)
    if attention_mask is not None:
        mask = mask.at[:, M:T - M].set(attention_mask.astype(jnp.int32))
    key_bias = jnp.where(mask[:, None, :] > 0, 0.0, NEG).astype(jnp.float32)   # (B, 1, TP)

    # Fused causal + key bias, built once OUTSIDE the kernel (overlaps with gathers).
    r = jnp.arange(TP)[:, None]
    c = jnp.arange(TP)[None, :]
    causal = jnp.where(c <= r, 0.0, NEG).astype(jnp.float32)               # (TP, TP)
    bias = causal[None, :, :] + key_bias                                   # (B, TP, TP)

    # Pre-scattered memory slab: prev_mem_tokens at rows [0:M] and [T-M:T], zeros elsewhere.
    mem_b = jnp.broadcast_to(prev_mems, (L, B, M, D)).astype(jnp.float32)
    mem_slab = (jnp.zeros((L, B, TP, D), jnp.float32)
                .at[:, :, :M, :].set(mem_b)
                .at[:, :, T - M:T, :].set(mem_b))

    # ---- fused base model (all layers + LN_f + LM head) ----
    logits_flat, newmem_block = run_forward(h0, bias, mem_slab, params)

    # ---- process_output ----
    logits = logits_flat.reshape(B, TP, VP)[:, M:M + SEQ, :V]              # strip mem/pad
    new_mems = newmem_block[:, :, T - M - BLK:T - BLK, :]                  # (L, B, M, D)
    out = {'logits': logits}
    if labels is not None:
        shift_logits = logits[:, :-1, :]
        shift_labels = labels[:, 1:]
        logp = jax.nn.log_softmax(shift_logits, axis=-1)
        nll = -jnp.take_along_axis(logp, shift_labels[..., None], axis=-1)[..., 0]
        if labels_mask is not None:
            # matches PyTorch: flat_mask = labels_mask[..., :-1]
            m = labels_mask[:, :-1].astype(jnp.float32)
            out['ce_loss'] = jnp.sum(nll * m) / jnp.maximum(jnp.sum(m), 1.0)
        else:
            out['ce_loss'] = jnp.mean(nll)
    # TODO(synk): HF .generate() / use_cache (past_key_values) incremental-decode path
    # (generate_mode) is not translated.
    return out, new_mems


if __name__ == "__main__":
    root = jax.random.PRNGKey(0)
    k_params, k_in, k_lab = jax.random.split(root, 3)
    params, prev_mems = init_params(k_params)
    input_ids = jax.random.randint(k_in, (B, SEQ), 0, V, dtype=jnp.int32)
    attention_mask = jnp.ones((B, SEQ), dtype=jnp.int32)
    labels = jax.random.randint(k_lab, (B, SEQ), 0, V, dtype=jnp.int32)

    out, new_mems = memory_cell_forward(params, prev_mems, input_ids,
                                        attention_mask=attention_mask, labels=labels)
    jax.block_until_ready(out['logits'])
    jax.block_until_ready(out['ce_loss'])
    jax.block_until_ready(new_mems)

    assert out['logits'].shape == (B, SEQ, V)
    assert new_mems.shape == (L, B, M, D)
    assert bool(jnp.all(jnp.isfinite(out['logits'])))
    assert bool(jnp.isfinite(out['ce_loss']))
    print("KERNEL_OK")
</pallas_src>

<mosaic_0001>
module attributes {stable_mosaic.version = 11 : i64} {
  func.func @fwd_kernel(%arg0: memref<2x16x32xf32, #tpu.memory_space<vmem>>, %arg1: memref<2x16x16xf32, #tpu.memory_space<vmem>>, %arg2: memref<2x2x16x32xf32, #tpu.memory_space<vmem>>, %arg3: memref<2x1x32xf32, #tpu.memory_space<vmem>>, %arg4: memref<2x1x32xf32, #tpu.memory_space<vmem>>, %arg5: memref<2x32x96xf32, #tpu.memory_space<vmem>>, %arg6: memref<2x1x96xf32, #tpu.memory_space<vmem>>, %arg7: memref<2x32x32xf32, #tpu.memory_space<vmem>>, %arg8: memref<2x1x32xf32, #tpu.memory_space<vmem>>, %arg9: memref<2x1x32xf32, #tpu.memory_space<vmem>>, %arg10: memref<2x1x32xf32, #tpu.memory_space<vmem>>, %arg11: memref<2x32x128xf32, #tpu.memory_space<vmem>>, %arg12: memref<2x1x128xf32, #tpu.memory_space<vmem>>, %arg13: memref<2x128x32xf32, #tpu.memory_space<vmem>>, %arg14: memref<2x1x32xf32, #tpu.memory_space<vmem>>, %arg15: memref<1x32xf32, #tpu.memory_space<vmem>>, %arg16: memref<1x32xf32, #tpu.memory_space<vmem>>, %arg17: memref<32x128xf32, #tpu.memory_space<vmem>>, %arg18: memref<32x128xf32, #tpu.memory_space<vmem>>, %arg19: memref<2x2x8x32xf32, #tpu.memory_space<vmem>>) attributes {dimension_semantics = [], scalar_prefetch = 0 : i64, scratch_operands = 0 : i64, tpu.core_type = #tpu.core_type<tc>} {
    %c0 = arith.constant 0 : index
    %c0_0 = arith.constant 0 : index
    %c0_1 = arith.constant 0 : index
    %0 = vector.load %arg0[%c0, %c0_0, %c0_1] : memref<2x16x32xf32, #tpu.memory_space<vmem>>, vector<2x16x32xf32>
    %c0_2 = arith.constant 0 : index
    %c0_3 = arith.constant 0 : index
    %c0_4 = arith.constant 0 : index
    %1 = vector.load %arg1[%c0_2, %c0_3, %c0_4] : memref<2x16x16xf32, #tpu.memory_space<vmem>>, vector<2x16x16xf32>
    %2 = tpu.iota {dimensions = array<i32: 1>} : vector<2x16x32xi32>
    %c2_i32 = arith.constant 2 : i32
    %3 = vector.broadcast %c2_i32 : i32 to vector<2x16x32xi32>
    %4 = arith.cmpi slt, %2, %3 : vector<2x16x32xi32>
    %c10_i32 = arith.constant 10 : i32
    %5 = vector.broadcast %c10_i32 : i32 to vector<2x16x32xi32>
    %6 = arith.cmpi sge, %2, %5 : vector<2x16x32xi32>
    %c12_i32 = arith.constant 12 : i32
    %7 = vector.broadcast %c12_i32 : i32 to vector<2x16x32xi32>
    %8 = arith.cmpi slt, %2, %7 : vector<2x16x32xi32>
    %9 = arith.andi %6, %8 : vector<2x16x32xi1>
    %10 = arith.ori %4, %9 : vector<2x16x32xi1>
    %c0_5 = arith.constant 0 : index
    %c0_6 = arith.constant 0 : index
    %c0_7 = arith.constant 0 : index
    %c0_8 = arith.constant 0 : index
    %11 = vector.load %arg2[%c0_5, %c0_6, %c0_7, %c0_8] : memref<2x2x16x32xf32, #tpu.memory_space<vmem>>, vector<1x2x16x32xf32>
    %12 = vector.shape_cast %11 : vector<1x2x16x32xf32> to vector<2x16x32xf32>
    %13 = arith.select %10, %12, %0 : vector<2x16x32xi1>, vector<2x16x32xf32>
    %c0_9 = arith.constant 0 : index
    %c0_10 = arith.constant 0 : index
    %c0_11 = arith.constant 0 : index
    %14 = vector.load %arg3[%c0_9, %c0_10, %c0_11] : memref<2x1x32xf32, #tpu.memory_space<vmem>>, vector<1x1x32xf32>
    %15 = vector.shape_cast %14 : vector<1x1x32xf32> to vector<1x32xf32>
    %c0_12 = arith.constant 0 : index
    %c0_13 = arith.constant 0 : index
    %c0_14 = arith.constant 0 : index
    %16 = vector.load %arg4[%c0_12, %c0_13, %c0_14] : memref<2x1x32xf32, #tpu.memory_space<vmem>>, vector<1x1x32xf32>
    %17 = vector.shape_cast %16 : vector<1x1x32xf32> to vector<1x32xf32>
    %cst = arith.constant dense<0.000000e+00> : vector<2x16xf32>
    %18 = vector.multi_reduction <add>, %13, %cst [2] : vector<2x16x32xf32> to vector<2x16xf32>
    %19 = vector.shape_cast %18 : vector<2x16xf32> to vector<2x16x1xf32>
    %cst_15 = arith.constant 3.200000e+01 : f32
    %20 = vector.broadcast %cst_15 : f32 to vector<2x16x1xf32>
    %21 = arith.divf %19, %20 : vector<2x16x1xf32>
    %22 = vector.broadcast %21 : vector<2x16x1xf32> to vector<2x16x32xf32>
    %23 = arith.subf %13, %22 : vector<2x16x32xf32>
    %24 = arith.mulf %23, %23 : vector<2x16x32xf32>
    %cst_16 = arith.constant dense<0.000000e+00> : vector<2x16xf32>
    %25 = vector.multi_reduction <add>, %24, %cst_16 [2] : vector<2x16x32xf32> to vector<2x16xf32>
    %26 = vector.shape_cast %25 : vector<2x16xf32> to vector<2x16x1xf32>
    %cst_17 = arith.constant 3.200000e+01 : f32
    %27 = vector.broadcast %cst_17 : f32 to vector<2x16x1xf32>
    %28 = arith.divf %26, %27 : vector<2x16x1xf32>
    %cst_18 = arith.constant 9.99999974E-6 : f32
    %29 = vector.broadcast %cst_18 : f32 to vector<2x16x1xf32>
    %30 = arith.addf %28, %29 : vector<2x16x1xf32>
    %31 = math.rsqrt %30 : vector<2x16x1xf32>
    %32 = vector.broadcast %31 : vector<2x16x1xf32> to vector<2x16x32xf32>
    %33 = arith.mulf %23, %32 : vector<2x16x32xf32>
    %34 = vector.shape_cast %15 : vector<1x32xf32> to vector<1x1x32xf32>
    %35 = vector.broadcast %34 : vector<1x1x32xf32> to vector<2x16x32xf32>
    %36 = arith.mulf %33, %35 : vector<2x16x32xf32>
    %37 = vector.shape_cast %17 : vector<1x32xf32> to vector<1x1x32xf32>
    %38 = vector.broadcast %37 : vector<1x1x32xf32> to vector<2x16x32xf32>
    %39 = arith.addf %36, %38 : vector<2x16x32xf32>
    %40 = vector.shape_cast %39 : vector<2x16x32xf32> to vector<32x32xf32>
    %c0_19 = arith.constant 0 : index
    %c0_20 = arith.constant 0 : index
    %c0_21 = arith.constant 0 : index
    %41 = vector.load %arg5[%c0_19, %c0_20, %c0_21] : memref<2x32x96xf32, #tpu.memory_space<vmem>>, vector<1x32x96xf32>
    %42 = vector.shape_cast %41 : vector<1x32x96xf32> to vector<32x96xf32>
    %cst_22 = arith.constant dense<0.000000e+00> : vector<32x96xf32>
    %43 = tpu.matmul %40, %42, %cst_22 {dimension_numbers = #tpu.dot_dimension_numbers<[1], [0], [0], [1], [0, 0, 1, 1], [], []>} : vector<32x32xf32>, vector<32x96xf32>, vector<32x96xf32> -> vector<32x96xf32>
    %c0_23 = arith.constant 0 : index
    %c0_24 = arith.constant 0 : index
    %c0_25 = arith.constant 0 : index
    %44 = vector.load %arg6[%c0_23, %c0_24, %c0_25] : memref<2x1x96xf32, #tpu.memory_space<vmem>>, vector<1x1x96xf32>
    %45 = vector.shape_cast %44 : vector<1x1x96xf32> to vector<1x96xf32>
    %46 = vector.broadcast %45 : vector<1x96xf32> to vector<32x96xf32>
    %47 = arith.addf %43, %46 : vector<32x96xf32>
    %48 = vector.extract_strided_slice %47 {offsets = [0, 0], sizes = [32, 16], strides = [1, 1]} : vector<32x96xf32> to vector<32x16xf32>
    %49 = vector.shape_cast %48 : vector<32x16xf32> to vector<2x16x16xf32>
    %50 = vector.extract_strided_slice %47 {offsets = [0, 32], sizes = [32, 16], strides = [1, 1]} : vector<32x96xf32> to vector<32x16xf32>
    %51 = vector.shape_cast %50 : vector<32x16xf32> to vector<2x16x16xf32>
    %52 = vector.extract_strided_slice %47 {offsets = [0, 64], sizes = [32, 16], strides = [1, 1]} : vector<32x96xf32> to vector<32x16xf32>
    %53 = vector.shape_cast %52 : vector<32x16xf32> to vector<2x16x16xf32>
    "tpu.trace_start"() <{level = 10 : i32, message = "bqd,bkd->bqk"}> : () -> ()
    %cst_26 = arith.constant dense<0.000000e+00> : vector<2x16x16xf32>
    %54 = tpu.matmul %49, %51, %cst_26 {dimension_numbers = #tpu.dot_dimension_numbers<[2], [2], [1], [1], [0, 0, 0, 1, 1, 1], [0], [0]>} : vector<2x16x16xf32>, vector<2x16x16xf32>, vector<2x16x16xf32> -> vector<2x16x16xf32>
    "tpu.trace_stop"() : () -> ()
    %cst_27 = arith.constant 2.500000e-01 : f32
    %55 = vector.broadcast %cst_27 : f32 to vector<2x16x16xf32>
    %56 = arith.mulf %54, %55 : vector<2x16x16xf32>
    %57 = arith.addf %56, %1 : vector<2x16x16xf32>
    %cst_28 = arith.constant dense<0xFF800000> : vector<2x16xf32>
    %58 = vector.multi_reduction <maximumf>, %57, %cst_28 [2] : vector<2x16x16xf32> to vector<2x16xf32>
    %59 = vector.shape_cast %58 : vector<2x16xf32> to vector<2x16x1xf32>
    %60 = vector.broadcast %59 : vector<2x16x1xf32> to vector<2x16x16xf32>
    %61 = arith.subf %57, %60 : vector<2x16x16xf32>
    %62 = math.exp %61 : vector<2x16x16xf32>
    %cst_29 = arith.constant dense<0.000000e+00> : vector<2x16xf32>
    %63 = vector.multi_reduction <add>, %62, %cst_29 [2] : vector<2x16x16xf32> to vector<2x16xf32>
    %64 = vector.shape_cast %63 : vector<2x16xf32> to vector<2x16x1xf32>
    %65 = tpu.reciprocal %64 {approx = true} : vector<2x16x1xf32> -> vector<2x16x1xf32>
    %66 = vector.broadcast %65 : vector<2x16x1xf32> to vector<2x16x16xf32>
    %67 = arith.mulf %62, %66 : vector<2x16x16xf32>
    "tpu.trace_start"() <{level = 10 : i32, message = "bqk,bkd->bqd"}> : () -> ()
    %cst_30 = arith.constant dense<0.000000e+00> : vector<2x16x16xf32>
    %68 = tpu.matmul %67, %53, %cst_30 {dimension_numbers = #tpu.dot_dimension_numbers<[2], [1], [1], [2], [0, 0, 0, 1, 1, 2], [0], [0]>} : vector<2x16x16xf32>, vector<2x16x16xf32>, vector<2x16x16xf32> -> vector<2x16x16xf32>
    "tpu.trace_stop"() : () -> ()
    %69 = vector.extract_strided_slice %47 {offsets = [0, 16], sizes = [32, 16], strides = [1, 1]} : vector<32x96xf32> to vector<32x16xf32>
    %70 = vector.shape_cast %69 : vector<32x16xf32> to vector<2x16x16xf32>
    %71 = vector.extract_strided_slice %47 {offsets = [0, 48], sizes = [32, 16], strides = [1, 1]} : vector<32x96xf32> to vector<32x16xf32>
    %72 = vector.shape_cast %71 : vector<32x16xf32> to vector<2x16x16xf32>
    %73 = vector.extract_strided_slice %47 {offsets = [0, 80], sizes = [32, 16], strides = [1, 1]} : vector<32x96xf32> to vector<32x16xf32>
    %74 = vector.shape_cast %73 : vector<32x16xf32> to vector<2x16x16xf32>
    "tpu.trace_start"() <{level = 10 : i32, message = "bqd,bkd->bqk"}> : () -> ()
    %cst_31 = arith.constant dense<0.000000e+00> : vector<2x16x16xf32>
    %75 = tpu.matmul %70, %72, %cst_31 {dimension_numbers = #tpu.dot_dimension_numbers<[2], [2], [1], [1], [0, 0, 0, 1, 1, 1], [0], [0]>} : vector<2x16x16xf32>, vector<2x16x16xf32>, vector<2x16x16xf32> -> vector<2x16x16xf32>
    "tpu.trace_stop"() : () -> ()
    %cst_32 = arith.constant 2.500000e-01 : f32
    %76 = vector.broadcast %cst_32 : f32 to vector<2x16x16xf32>
    %77 = arith.mulf %75, %76 : vector<2x16x16xf32>
    %78 = arith.addf %77, %1 : vector<2x16x16xf32>
    %cst_33 = arith.constant dense<0xFF800000> : vector<2x16xf32>
    %79 = vector.multi_reduction <maximumf>, %78, %cst_33 [2] : vector<2x16x16xf32> to vector<2x16xf32>
    %80 = vector.shape_cast %79 : vector<2x16xf32> to vector<2x16x1xf32>
    %81 = vector.broadcast %80 : vector<2x16x1xf32> to vector<2x16x16xf32>
    %82 = arith.subf %78, %81 : vector<2x16x16xf32>
    %83 = math.exp %82 : vector<2x16x16xf32>
    %cst_34 = arith.constant dense<0.000000e+00> : vector<2x16xf32>
    %84 = vector.multi_reduction <add>, %83, %cst_34 [2] : vector<2x16x16xf32> to vector<2x16xf32>
    %85 = vector.shape_cast %84 : vector<2x16xf32> to vector<2x16x1xf32>
    %86 = tpu.reciprocal %85 {approx = true} : vector<2x16x1xf32> -> vector<2x16x1xf32>
    %87 = vector.broadcast %86 : vector<2x16x1xf32> to vector<2x16x16xf32>
    %88 = arith.mulf %83, %87 : vector<2x16x16xf32>
    "tpu.trace_start"() <{level = 10 : i32, message = "bqk,bkd->bqd"}> : () -> ()
    %cst_35 = arith.constant dense<0.000000e+00> : vector<2x16x16xf32>
    %89 = tpu.matmul %88, %74, %cst_35 {dimension_numbers = #tpu.dot_dimension_numbers<[2], [1], [1], [2], [0, 0, 0, 1, 1, 2], [0], [0]>} : vector<2x16x16xf32>, vector<2x16x16xf32>, vector<2x16x16xf32> -> vector<2x16x16xf32>
    "tpu.trace_stop"() : () -> ()
    %90 = tpu.concatenate %68, %89 in 2 : vector<2x16x16xf32>, vector<2x16x16xf32> -> vector<2x16x32xf32>
    %91 = vector.shape_cast %90 : vector<2x16x32xf32> to vector<32x32xf32>
    %c0_36 = arith.constant 0 : index
    %c0_37 = arith.constant 0 : index
    %c0_38 = arith.constant 0 : index
    %92 = vector.load %arg7[%c0_36, %c0_37, %c0_38] : memref<2x32x32xf32, #tpu.memory_space<vmem>>, vector<1x32x32xf32>
    %93 = vector.shape_cast %92 : vector<1x32x32xf32> to vector<32x32xf32>
    %cst_39 = arith.constant dense<0.000000e+00> : vector<32x32xf32>
    %94 = tpu.matmul %91, %93, %cst_39 {dimension_numbers = #tpu.dot_dimension_numbers<[1], [0], [0], [1], [0, 0, 1, 1], [], []>} : vector<32x32xf32>, vector<32x32xf32>, vector<32x32xf32> -> vector<32x32xf32>
    %c0_40 = arith.constant 0 : index
    %c0_41 = arith.constant 0 : index
    %c0_42 = arith.constant 0 : index
    %95 = vector.load %arg8[%c0_40, %c0_41, %c0_42] : memref<2x1x32xf32, #tpu.memory_space<vmem>>, vector<1x1x32xf32>
    %96 = vector.shape_cast %95 : vector<1x1x32xf32> to vector<1x32xf32>
    %97 = vector.broadcast %96 : vector<1x32xf32> to vector<32x32xf32>
    %98 = arith.addf %94, %97 : vector<32x32xf32>
    %99 = vector.shape_cast %98 : vector<32x32xf32> to vector<2x16x32xf32>
    %100 = arith.addf %13, %99 : vector<2x16x32xf32>
    %c0_43 = arith.constant 0 : index
    %c0_44 = arith.constant 0 : index
    %c0_45 = arith.constant 0 : index
    %101 = vector.load %arg9[%c0_43, %c0_44, %c0_45] : memref<2x1x32xf32, #tpu.memory_space<vmem>>, vector<1x1x32xf32>
    %102 = vector.shape_cast %101 : vector<1x1x32xf32> to vector<1x32xf32>
    %c0_46 = arith.constant 0 : index
    %c0_47 = arith.constant 0 : index
    %c0_48 = arith.constant 0 : index
    %103 = vector.load %arg10[%c0_46, %c0_47, %c0_48] : memref<2x1x32xf32, #tpu.memory_space<vmem>>, vector<1x1x32xf32>
    %104 = vector.shape_cast %103 : vector<1x1x32xf32> to vector<1x32xf32>
    %cst_49 = arith.constant dense<0.000000e+00> : vector<2x16xf32>
    %105 = vector.multi_reduction <add>, %100, %cst_49 [2] : vector<2x16x32xf32> to vector<2x16xf32>
    %106 = vector.shape_cast %105 : vector<2x16xf32> to vector<2x16x1xf32>
    %cst_50 = arith.constant 3.200000e+01 : f32
    %107 = vector.broadcast %cst_50 : f32 to vector<2x16x1xf32>
    %108 = arith.divf %106, %107 : vector<2x16x1xf32>
    %109 = vector.broadcast %108 : vector<2x16x1xf32> to vector<2x16x32xf32>
    %110 = arith.subf %100, %109 : vector<2x16x32xf32>
    %111 = arith.mulf %110, %110 : vector<2x16x32xf32>
    %cst_51 = arith.constant dense<0.000000e+00> : vector<2x16xf32>
    %112 = vector.multi_reduction <add>, %111, %cst_51 [2] : vector<2x16x32xf32> to vector<2x16xf32>
    %113 = vector.shape_cast %112 : vector<2x16xf32> to vector<2x16x1xf32>
    %cst_52 = arith.constant 3.200000e+01 : f32
    %114 = vector.broadcast %cst_52 : f32 to vector<2x16x1xf32>
    %115 = arith.divf %113, %114 : vector<2x16x1xf32>
    %cst_53 = arith.constant 9.99999974E-6 : f32
    %116 = vector.broadcast %cst_53 : f32 to vector<2x16x1xf32>
    %117 = arith.addf %115, %116 : vector<2x16x1xf32>
    %118 = math.rsqrt %117 : vector<2x16x1xf32>
    %119 = vector.broadcast %118 : vector<2x16x1xf32> to vector<2x16x32xf32>
    %120 = arith.mulf %110, %119 : vector<2x16x32xf32>
    %121 = vector.shape_cast %102 : vector<1x32xf32> to vector<1x1x32xf32>
    %122 = vector.broadcast %121 : vector<1x1x32xf32> to vector<2x16x32xf32>
    %123 = arith.mulf %120, %122 : vector<2x16x32xf32>
    %124 = vector.shape_cast %104 : vector<1x32xf32> to vector<1x1x32xf32>
    %125 = vector.broadcast %124 : vector<1x1x32xf32> to vector<2x16x32xf32>
    %126 = arith.addf %123, %125 : vector<2x16x32xf32>
    %127 = vector.shape_cast %126 : vector<2x16x32xf32> to vector<32x32xf32>
    %c0_54 = arith.constant 0 : index
    %c0_55 = arith.constant 0 : index
    %c0_56 = arith.constant 0 : index
    %128 = vector.load %arg11[%c0_54, %c0_55, %c0_56] : memref<2x32x128xf32, #tpu.memory_space<vmem>>, vector<1x32x128xf32>
    %129 = vector.shape_cast %128 : vector<1x32x128xf32> to vector<32x128xf32>
    %cst_57 = arith.constant dense<0.000000e+00> : vector<32x128xf32>
    %130 = tpu.matmul %127, %129, %cst_57 {dimension_numbers = #tpu.dot_dimension_numbers<[1], [0], [0], [1], [0, 0, 1, 1], [], []>} : vector<32x32xf32>, vector<32x128xf32>, vector<32x128xf32> -> vector<32x128xf32>
    %c0_58 = arith.constant 0 : index
    %c0_59 = arith.constant 0 : index
    %c0_60 = arith.constant 0 : index
    %131 = vector.load %arg12[%c0_58, %c0_59, %c0_60] : memref<2x1x128xf32, #tpu.memory_space<vmem>>, vector<1x1x128xf32>
    %132 = vector.shape_cast %131 : vector<1x1x128xf32> to vector<1x128xf32>
    %133 = vector.broadcast %132 : vector<1x128xf32> to vector<32x128xf32>
    %134 = arith.addf %130, %133 : vector<32x128xf32>
    %135 = arith.mulf %134, %134 : vector<32x128xf32>
    %136 = arith.mulf %134, %135 : vector<32x128xf32>
    %cst_61 = arith.constant 4.471500e-02 : f32
    %137 = vector.broadcast %cst_61 : f32 to vector<32x128xf32>
    %138 = arith.mulf %137, %136 : vector<32x128xf32>
    %139 = arith.addf %134, %138 : vector<32x128xf32>
    %cst_62 = arith.constant 0.797884583 : f32
    %140 = vector.broadcast %cst_62 : f32 to vector<32x128xf32>
    %141 = arith.mulf %140, %139 : vector<32x128xf32>
    %142 = math.tanh %141 : vector<32x128xf32>
    %cst_63 = arith.constant 1.000000e+00 : f32
    %143 = vector.broadcast %cst_63 : f32 to vector<32x128xf32>
    %144 = arith.addf %143, %142 : vector<32x128xf32>
    %cst_64 = arith.constant 5.000000e-01 : f32
    %145 = vector.broadcast %cst_64 : f32 to vector<32x128xf32>
    %146 = arith.mulf %145, %144 : vector<32x128xf32>
    %147 = arith.mulf %134, %146 : vector<32x128xf32>
    %c0_65 = arith.constant 0 : index
    %c0_66 = arith.constant 0 : index
    %c0_67 = arith.constant 0 : index
    %148 = vector.load %arg13[%c0_65, %c0_66, %c0_67] : memref<2x128x32xf32, #tpu.memory_space<vmem>>, vector<1x128x32xf32>
    %149 = vector.shape_cast %148 : vector<1x128x32xf32> to vector<128x32xf32>
    %cst_68 = arith.constant dense<0.000000e+00> : vector<32x32xf32>
    %150 = tpu.matmul %147, %149, %cst_68 {dimension_numbers = #tpu.dot_dimension_numbers<[1], [0], [0], [1], [0, 0, 1, 1], [], []>} : vector<32x128xf32>, vector<128x32xf32>, vector<32x32xf32> -> vector<32x32xf32>
    %c0_69 = arith.constant 0 : index
    %c0_70 = arith.constant 0 : index
    %c0_71 = arith.constant 0 : index
    %151 = vector.load %arg14[%c0_69, %c0_70, %c0_71] : memref<2x1x32xf32, #tpu.memory_space<vmem>>, vector<1x1x32xf32>
    %152 = vector.shape_cast %151 : vector<1x1x32xf32> to vector<1x32xf32>
    %153 = vector.broadcast %152 : vector<1x32xf32> to vector<32x32xf32>
    %154 = arith.addf %150, %153 : vector<32x32xf32>
    %155 = vector.shape_cast %154 : vector<32x32xf32> to vector<2x16x32xf32>
    %156 = arith.addf %100, %155 : vector<2x16x32xf32>
    %157 = vector.extract_strided_slice %156 {offsets = [0, 8, 0], sizes = [2, 8, 32], strides = [1, 1, 1]} : vector<2x16x32xf32> to vector<2x8x32xf32>
    %c0_72 = arith.constant 0 : index
    %c0_73 = arith.constant 0 : index
    %c0_74 = arith.constant 0 : index
    %c0_75 = arith.constant 0 : index
    %158 = vector.load %arg19[%c0_72, %c0_73, %c0_74, %c0_75] : memref<2x2x8x32xf32, #tpu.memory_space<vmem>>, vector<1x2x8x32xf32>
    %159 = vector.shape_cast %158 : vector<1x2x8x32xf32> to vector<2x8x32xf32>
    %160 = vector.shape_cast %157 : vector<2x8x32xf32> to vector<1x2x8x32xf32>
    tpu.vector_store %arg19[%c0_72, %c0_73, %c0_74, %c0_75], %160 {strides = array<i32>} : memref<2x2x8x32xf32, #tpu.memory_space<vmem>>, vector<1x2x8x32xf32>,
    %c1 = arith.constant 1 : index
    %c0_76 = arith.constant 0 : index
    %c0_77 = arith.constant 0 : index
    %c0_78 = arith.constant 0 : index
    %161 = vector.load %arg2[%c1, %c0_76, %c0_77, %c0_78] : memref<2x2x16x32xf32, #tpu.memory_space<vmem>>, vector<1x2x16x32xf32>
    %162 = vector.shape_cast %161 : vector<1x2x16x32xf32> to vector<2x16x32xf32>
    %163 = arith.select %10, %162, %156 : vector<2x16x32xi1>, vector<2x16x32xf32>
    %c1_79 = arith.constant 1 : index
    %c0_80 = arith.constant 0 : index
    %c0_81 = arith.constant 0 : index
    %164 = vector.load %arg3[%c1_79, %c0_80, %c0_81] : memref<2x1x32xf32, #tpu.memory_space<vmem>>, vector<1x1x32xf32>
    %165 = vector.shape_cast %164 : vector<1x1x32xf32> to vector<1x32xf32>
    %c1_82 = arith.constant 1 : index
    %c0_83 = arith.constant 0 : index
    %c0_84 = arith.constant 0 : index
    %166 = vector.load %arg4[%c1_82, %c0_83, %c0_84] : memref<2x1x32xf32, #tpu.memory_space<vmem>>, vector<1x1x32xf32>
    %167 = vector.shape_cast %166 : vector<1x1x32xf32> to vector<1x32xf32>
    %cst_85 = arith.constant dense<0.000000e+00> : vector<2x16xf32>
    %168 = vector.multi_reduction <add>, %163, %cst_85 [2] : vector<2x16x32xf32> to vector<2x16xf32>
    %169 = vector.shape_cast %168 : vector<2x16xf32> to vector<2x16x1xf32>
    %cst_86 = arith.constant 3.200000e+01 : f32
    %170 = vector.broadcast %cst_86 : f32 to vector<2x16x1xf32>
    %171 = arith.divf %169, %170 : vector<2x16x1xf32>
    %172 = vector.broadcast %171 : vector<2x16x1xf32> to vector<2x16x32xf32>
    %173 = arith.subf %163, %172 : vector<2x16x32xf32>
    %174 = arith.mulf %173, %173 : vector<2x16x32xf32>
    %cst_87 = arith.constant dense<0.000000e+00> : vector<2x16xf32>
    %175 = vector.multi_reduction <add>, %174, %cst_87 [2] : vector<2x16x32xf32> to vector<2x16xf32>
    %176 = vector.shape_cast %175 : vector<2x16xf32> to vector<2x16x1xf32>
    %cst_88 = arith.constant 3.200000e+01 : f32
    %177 = vector.broadcast %cst_88 : f32 to vector<2x16x1xf32>
    %178 = arith.divf %176, %177 : vector<2x16x1xf32>
    %cst_89 = arith.constant 9.99999974E-6 : f32
    %179 = vector.broadcast %cst_89 : f32 to vector<2x16x1xf32>
    %180 = arith.addf %178, %179 : vector<2x16x1xf32>
    %181 = math.rsqrt %180 : vector<2x16x1xf32>
    %182 = vector.broadcast %181 : vector<2x16x1xf32> to vector<2x16x32xf32>
    %183 = arith.mulf %173, %182 : vector<2x16x32xf32>
    %184 = vector.shape_cast %165 : vector<1x32xf32> to vector<1x1x32xf32>
    %185 = vector.broadcast %184 : vector<1x1x32xf32> to vector<2x16x32xf32>
    %186 = arith.mulf %183, %185 : vector<2x16x32xf32>
    %187 = vector.shape_cast %167 : vector<1x32xf32> to vector<1x1x32xf32>
    %188 = vector.broadcast %187 : vector<1x1x32xf32> to vector<2x16x32xf32>
    %189 = arith.addf %186, %188 : vector<2x16x32xf32>
    %190 = vector.shape_cast %189 : vector<2x16x32xf32> to vector<32x32xf32>
    %c1_90 = arith.constant 1 : index
    %c0_91 = arith.constant 0 : index
    %c0_92 = arith.constant 0 : index
    %191 = vector.load %arg5[%c1_90, %c0_91, %c0_92] : memref<2x32x96xf32, #tpu.memory_space<vmem>>, vector<1x32x96xf32>
    %192 = vector.shape_cast %191 : vector<1x32x96xf32> to vector<32x96xf32>
    %cst_93 = arith.constant dense<0.000000e+00> : vector<32x96xf32>
    %193 = tpu.matmul %190, %192, %cst_93 {dimension_numbers = #tpu.dot_dimension_numbers<[1], [0], [0], [1], [0, 0, 1, 1], [], []>} : vector<32x32xf32>, vector<32x96xf32>, vector<32x96xf32> -> vector<32x96xf32>
    %c1_94 = arith.constant 1 : index
    %c0_95 = arith.constant 0 : index
    %c0_96 = arith.constant 0 : index
    %194 = vector.load %arg6[%c1_94, %c0_95, %c0_96] : memref<2x1x96xf32, #tpu.memory_space<vmem>>, vector<1x1x96xf32>
    %195 = vector.shape_cast %194 : vector<1x1x96xf32> to vector<1x96xf32>
    %196 = vector.broadcast %195 : vector<1x96xf32> to vector<32x96xf32>
    %197 = arith.addf %193, %196 : vector<32x96xf32>
    %198 = vector.extract_strided_slice %197 {offsets = [0, 0], sizes = [32, 16], strides = [1, 1]} : vector<32x96xf32> to vector<32x16xf32>
    %199 = vector.shape_cast %198 : vector<32x16xf32> to vector<2x16x16xf32>
    %200 = vector.extract_strided_slice %197 {offsets = [0, 32], sizes = [32, 16], strides = [1, 1]} : vector<32x96xf32> to vector<32x16xf32>
    %201 = vector.shape_cast %200 : vector<32x16xf32> to vector<2x16x16xf32>
    %202 = vector.extract_strided_slice %197 {offsets = [0, 64], sizes = [32, 16], strides = [1, 1]} : vector<32x96xf32> to vector<32x16xf32>
    %203 = vector.shape_cast %202 : vector<32x16xf32> to vector<2x16x16xf32>
    "tpu.trace_start"() <{level = 10 : i32, message = "bqd,bkd->bqk"}> : () -> ()
    %cst_97 = arith.constant dense<0.000000e+00> : vector<2x16x16xf32>
    %204 = tpu.matmul %199, %201, %cst_97 {dimension_numbers = #tpu.dot_dimension_numbers<[2], [2], [1], [1], [0, 0, 0, 1, 1, 1], [0], [0]>} : vector<2x16x16xf32>, vector<2x16x16xf32>, vector<2x16x16xf32> -> vector<2x16x16xf32>
    "tpu.trace_stop"() : () -> ()
    %cst_98 = arith.constant 2.500000e-01 : f32
    %205 = vector.broadcast %cst_98 : f32 to vector<2x16x16xf32>
    %206 = arith.mulf %204, %205 : vector<2x16x16xf32>
    %207 = arith.addf %206, %1 : vector<2x16x16xf32>
    %cst_99 = arith.constant dense<0xFF800000> : vector<2x16xf32>
    %208 = vector.multi_reduction <maximumf>, %207, %cst_99 [2] : vector<2x16x16xf32> to vector<2x16xf32>
    %209 = vector.shape_cast %208 : vector<2x16xf32> to vector<2x16x1xf32>
    %210 = vector.broadcast %209 : vector<2x16x1xf32> to vector<2x16x16xf32>
    %211 = arith.subf %207, %210 : vector<2x16x16xf32>
    %212 = math.exp %211 : vector<2x16x16xf32>
    %cst_100 = arith.constant dense<0.000000e+00> : vector<2x16xf32>
    %213 = vector.multi_reduction <add>, %212, %cst_100 [2] : vector<2x16x16xf32> to vector<2x16xf32>
    %214 = vector.shape_cast %213 : vector<2x16xf32> to vector<2x16x1xf32>
    %215 = tpu.reciprocal %214 {approx = true} : vector<2x16x1xf32> -> vector<2x16x1xf32>
    %216 = vector.broadcast %215 : vector<2x16x1xf32> to vector<2x16x16xf32>
    %217 = arith.mulf %212, %216 : vector<2x16x16xf32>
    "tpu.trace_start"() <{level = 10 : i32, message = "bqk,bkd->bqd"}> : () -> ()
    %cst_101 = arith.constant dense<0.000000e+00> : vector<2x16x16xf32>
    %218 = tpu.matmul %217, %203, %cst_101 {dimension_numbers = #tpu.dot_dimension_numbers<[2], [1], [1], [2], [0, 0, 0, 1, 1, 2], [0], [0]>} : vector<2x16x16xf32>, vector<2x16x16xf32>, vector<2x16x16xf32> -> vector<2x16x16xf32>
    "tpu.trace_stop"() : () -> ()
    %219 = vector.extract_strided_slice %197 {offsets = [0, 16], sizes = [32, 16], strides = [1, 1]} : vector<32x96xf32> to vector<32x16xf32>
    %220 = vector.shape_cast %219 : vector<32x16xf32> to vector<2x16x16xf32>
    %221 = vector.extract_strided_slice %197 {offsets = [0, 48], sizes = [32, 16], strides = [1, 1]} : vector<32x96xf32> to vector<32x16xf32>
    %222 = vector.shape_cast %221 : vector<32x16xf32> to vector<2x16x16xf32>
    %223 = vector.extract_strided_slice %197 {offsets = [0, 80], sizes = [32, 16], strides = [1, 1]} : vector<32x96xf32> to vector<32x16xf32>
    %224 = vector.shape_cast %223 : vector<32x16xf32> to vector<2x16x16xf32>
    "tpu.trace_start"() <{level = 10 : i32, message = "bqd,bkd->bqk"}> : () -> ()
    %cst_102 = arith.constant dense<0.000000e+00> : vector<2x16x16xf32>
    %225 = tpu.matmul %220, %222, %cst_102 {dimension_numbers = #tpu.dot_dimension_numbers<[2], [2], [1], [1], [0, 0, 0, 1, 1, 1], [0], [0]>} : vector<2x16x16xf32>, vector<2x16x16xf32>, vector<2x16x16xf32> -> vector<2x16x16xf32>
    "tpu.trace_stop"() : () -> ()
    %cst_103 = arith.constant 2.500000e-01 : f32
    %226 = vector.broadcast %cst_103 : f32 to vector<2x16x16xf32>
    %227 = arith.mulf %225, %226 : vector<2x16x16xf32>
    %228 = arith.addf %227, %1 : vector<2x16x16xf32>
    %cst_104 = arith.constant dense<0xFF800000> : vector<2x16xf32>
    %229 = vector.multi_reduction <maximumf>, %228, %cst_104 [2] : vector<2x16x16xf32> to vector<2x16xf32>
    %230 = vector.shape_cast %229 : vector<2x16xf32> to vector<2x16x1xf32>
    %231 = vector.broadcast %230 : vector<2x16x1xf32> to vector<2x16x16xf32>
    %232 = arith.subf %228, %231 : vector<2x16x16xf32>
    %233 = math.exp %232 : vector<2x16x16xf32>
    %cst_105 = arith.constant dense<0.000000e+00> : vector<2x16xf32>
    %234 = vector.multi_reduction <add>, %233, %cst_105 [2] : vector<2x16x16xf32> to vector<2x16xf32>
    %235 = vector.shape_cast %234 : vector<2x16xf32> to vector<2x16x1xf32>
    %236 = tpu.reciprocal %235 {approx = true} : vector<2x16x1xf32> -> vector<2x16x1xf32>
    %237 = vector.broadcast %236 : vector<2x16x1xf32> to vector<2x16x16xf32>
    %238 = arith.mulf %233, %237 : vector<2x16x16xf32>
    "tpu.trace_start"() <{level = 10 : i32, message = "bqk,bkd->bqd"}> : () -> ()
    %cst_106 = arith.constant dense<0.000000e+00> : vector<2x16x16xf32>
    %239 = tpu.matmul %238, %224, %cst_106 {dimension_numbers = #tpu.dot_dimension_numbers<[2], [1], [1], [2], [0, 0, 0, 1, 1, 2], [0], [0]>} : vector<2x16x16xf32>, vector<2x16x16xf32>, vector<2x16x16xf32> -> vector<2x16x16xf32>
    "tpu.trace_stop"() : () -> ()
    %240 = tpu.concatenate %218, %239 in 2 : vector<2x16x16xf32>, vector<2x16x16xf32> -> vector<2x16x32xf32>
    %241 = vector.shape_cast %240 : vector<2x16x32xf32> to vector<32x32xf32>
    %c1_107 = arith.constant 1 : index
    %c0_108 = arith.constant 0 : index
    %c0_109 = arith.constant 0 : index
    %242 = vector.load %arg7[%c1_107, %c0_108, %c0_109] : memref<2x32x32xf32, #tpu.memory_space<vmem>>, vector<1x32x32xf32>
    %243 = vector.shape_cast %242 : vector<1x32x32xf32> to vector<32x32xf32>
    %cst_110 = arith.constant dense<0.000000e+00> : vector<32x32xf32>
    %244 = tpu.matmul %241, %243, %cst_110 {dimension_numbers = #tpu.dot_dimension_numbers<[1], [0], [0], [1], [0, 0, 1, 1], [], []>} : vector<32x32xf32>, vector<32x32xf32>, vector<32x32xf32> -> vector<32x32xf32>
    %c1_111 = arith.constant 1 : index
    %c0_112 = arith.constant 0 : index
    %c0_113 = arith.constant 0 : index
    %245 = vector.load %arg8[%c1_111, %c0_112, %c0_113] : memref<2x1x32xf32, #tpu.memory_space<vmem>>, vector<1x1x32xf32>
    %246 = vector.shape_cast %245 : vector<1x1x32xf32> to vector<1x32xf32>
    %247 = vector.broadcast %246 : vector<1x32xf32> to vector<32x32xf32>
    %248 = arith.addf %244, %247 : vector<32x32xf32>
    %249 = vector.shape_cast %248 : vector<32x32xf32> to vector<2x16x32xf32>
    %250 = arith.addf %163, %249 : vector<2x16x32xf32>
    %c1_114 = arith.constant 1 : index
    %c0_115 = arith.constant 0 : index
    %c0_116 = arith.constant 0 : index
    %251 = vector.load %arg9[%c1_114, %c0_115, %c0_116] : memref<2x1x32xf32, #tpu.memory_space<vmem>>, vector<1x1x32xf32>
    %252 = vector.shape_cast %251 : vector<1x1x32xf32> to vector<1x32xf32>
    %c1_117 = arith.constant 1 : index
    %c0_118 = arith.constant 0 : index
    %c0_119 = arith.constant 0 : index
    %253 = vector.load %arg10[%c1_117, %c0_118, %c0_119] : memref<2x1x32xf32, #tpu.memory_space<vmem>>, vector<1x1x32xf32>
    %254 = vector.shape_cast %253 : vector<1x1x32xf32> to vector<1x32xf32>
    %cst_120 = arith.constant dense<0.000000e+00> : vector<2x16xf32>
    %255 = vector.multi_reduction <add>, %250, %cst_120 [2] : vector<2x16x32xf32> to vector<2x16xf32>
    %256 = vector.shape_cast %255 : vector<2x16xf32> to vector<2x16x1xf32>
    %cst_121 = arith.constant 3.200000e+01 : f32
    %257 = vector.broadcast %cst_121 : f32 to vector<2x16x1xf32>
    %258 = arith.divf %256, %257 : vector<2x16x1xf32>
    %259 = vector.broadcast %258 : vector<2x16x1xf32> to vector<2x16x32xf32>
    %260 = arith.subf %250, %259 : vector<2x16x32xf32>
    %261 = arith.mulf %260, %260 : vector<2x16x32xf32>
    %cst_122 = arith.constant dense<0.000000e+00> : vector<2x16xf32>
    %262 = vector.multi_reduction <add>, %261, %cst_122 [2] : vector<2x16x32xf32> to vector<2x16xf32>
    %263 = vector.shape_cast %262 : vector<2x16xf32> to vector<2x16x1xf32>
    %cst_123 = arith.constant 3.200000e+01 : f32
    %264 = vector.broadcast %cst_123 : f32 to vector<2x16x1xf32>
    %265 = arith.divf %263, %264 : vector<2x16x1xf32>
    %cst_124 = arith.constant 9.99999974E-6 : f32
    %266 = vector.broadcast %cst_124 : f32 to vector<2x16x1xf32>
    %267 = arith.addf %265, %266 : vector<2x16x1xf32>
    %268 = math.rsqrt %267 : vector<2x16x1xf32>
    %269 = vector.broadcast %268 : vector<2x16x1xf32> to vector<2x16x32xf32>
    %270 = arith.mulf %260, %269 : vector<2x16x32xf32>
    %271 = vector.shape_cast %252 : vector<1x32xf32> to vector<1x1x32xf32>
    %272 = vector.broadcast %271 : vector<1x1x32xf32> to vector<2x16x32xf32>
    %273 = arith.mulf %270, %272 : vector<2x16x32xf32>
    %274 = vector.shape_cast %254 : vector<1x32xf32> to vector<1x1x32xf32>
    %275 = vector.broadcast %274 : vector<1x1x32xf32> to vector<2x16x32xf32>
    %276 = arith.addf %273, %275 : vector<2x16x32xf32>
    %277 = vector.shape_cast %276 : vector<2x16x32xf32> to vector<32x32xf32>
    %c1_125 = arith.constant 1 : index
    %c0_126 = arith.constant 0 : index
    %c0_127 = arith.constant 0 : index
    %278 = vector.load %arg11[%c1_125, %c0_126, %c0_127] : memref<2x32x128xf32, #tpu.memory_space<vmem>>, vector<1x32x128xf32>
    %279 = vector.shape_cast %278 : vector<1x32x128xf32> to vector<32x128xf32>
    %cst_128 = arith.constant dense<0.000000e+00> : vector<32x128xf32>
    %280 = tpu.matmul %277, %279, %cst_128 {dimension_numbers = #tpu.dot_dimension_numbers<[1], [0], [0], [1], [0, 0, 1, 1], [], []>} : vector<32x32xf32>, vector<32x128xf32>, vector<32x128xf32> -> vector<32x128xf32>
    %c1_129 = arith.constant 1 : index
    %c0_130 = arith.constant 0 : index
    %c0_131 = arith.constant 0 : index
    %281 = vector.load %arg12[%c1_129, %c0_130, %c0_131] : memref<2x1x128xf32, #tpu.memory_space<vmem>>, vector<1x1x128xf32>
    %282 = vector.shape_cast %281 : vector<1x1x128xf32> to vector<1x128xf32>
    %283 = vector.broadcast %282 : vector<1x128xf32> to vector<32x128xf32>
    %284 = arith.addf %280, %283 : vector<32x128xf32>
    %285 = arith.mulf %284, %284 : vector<32x128xf32>
    %286 = arith.mulf %284, %285 : vector<32x128xf32>
    %cst_132 = arith.constant 4.471500e-02 : f32
    %287 = vector.broadcast %cst_132 : f32 to vector<32x128xf32>
    %288 = arith.mulf %287, %286 : vector<32x128xf32>
    %289 = arith.addf %284, %288 : vector<32x128xf32>
    %cst_133 = arith.constant 0.797884583 : f32
    %290 = vector.broadcast %cst_133 : f32 to vector<32x128xf32>
    %291 = arith.mulf %290, %289 : vector<32x128xf32>
    %292 = math.tanh %291 : vector<32x128xf32>
    %cst_134 = arith.constant 1.000000e+00 : f32
    %293 = vector.broadcast %cst_134 : f32 to vector<32x128xf32>
    %294 = arith.addf %293, %292 : vector<32x128xf32>
    %cst_135 = arith.constant 5.000000e-01 : f32
    %295 = vector.broadcast %cst_135 : f32 to vector<32x128xf32>
    %296 = arith.mulf %295, %294 : vector<32x128xf32>
    %297 = arith.mulf %284, %296 : vector<32x128xf32>
    %c1_136 = arith.constant 1 : index
    %c0_137 = arith.constant 0 : index
    %c0_138 = arith.constant 0 : index
    %298 = vector.load %arg13[%c1_136, %c0_137, %c0_138] : memref<2x128x32xf32, #tpu.memory_space<vmem>>, vector<1x128x32xf32>
    %299 = vector.shape_cast %298 : vector<1x128x32xf32> to vector<128x32xf32>
    %cst_139 = arith.constant dense<0.000000e+00> : vector<32x32xf32>
    %300 = tpu.matmul %297, %299, %cst_139 {dimension_numbers = #tpu.dot_dimension_numbers<[1], [0], [0], [1], [0, 0, 1, 1], [], []>} : vector<32x128xf32>, vector<128x32xf32>, vector<32x32xf32> -> vector<32x32xf32>
    %c1_140 = arith.constant 1 : index
    %c0_141 = arith.constant 0 : index
    %c0_142 = arith.constant 0 : index
    %301 = vector.load %arg14[%c1_140, %c0_141, %c0_142] : memref<2x1x32xf32, #tpu.memory_space<vmem>>, vector<1x1x32xf32>
    %302 = vector.shape_cast %301 : vector<1x1x32xf32> to vector<1x32xf32>
    %303 = vector.broadcast %302 : vector<1x32xf32> to vector<32x32xf32>
    %304 = arith.addf %300, %303 : vector<32x32xf32>
    %305 = vector.shape_cast %304 : vector<32x32xf32> to vector<2x16x32xf32>
    %306 = arith.addf %250, %305 : vector<2x16x32xf32>
    %307 = vector.extract_strided_slice %306 {offsets = [0, 8, 0], sizes = [2, 8, 32], strides = [1, 1, 1]} : vector<2x16x32xf32> to vector<2x8x32xf32>
    %c1_143 = arith.constant 1 : index
    %c0_144 = arith.constant 0 : index
    %c0_145 = arith.constant 0 : index
    %c0_146 = arith.constant 0 : index
    %308 = vector.load %arg19[%c1_143, %c0_144, %c0_145, %c0_146] : memref<2x2x8x32xf32, #tpu.memory_space<vmem>>, vector<1x2x8x32xf32>
    %309 = vector.shape_cast %308 : vector<1x2x8x32xf32> to vector<2x8x32xf32>
    %310 = vector.shape_cast %307 : vector<2x8x32xf32> to vector<1x2x8x32xf32>
    tpu.vector_store %arg19[%c1_143, %c0_144, %c0_145, %c0_146], %310 {strides = array<i32>} : memref<2x2x8x32xf32, #tpu.memory_space<vmem>>, vector<1x2x8x32xf32>,
    %c0_147 = arith.constant 0 : index
    %c0_148 = arith.constant 0 : index
    %311 = vector.load %arg15[%c0_147, %c0_148] : memref<1x32xf32, #tpu.memory_space<vmem>>, vector<1x32xf32>
    %c0_149 = arith.constant 0 : index
    %c0_150 = arith.constant 0 : index
    %312 = vector.load %arg16[%c0_149, %c0_150] : memref<1x32xf32, #tpu.memory_space<vmem>>, vector<1x32xf32>
    %cst_151 = arith.constant dense<0.000000e+00> : vector<2x16xf32>
    %313 = vector.multi_reduction <add>, %306, %cst_151 [2] : vector<2x16x32xf32> to vector<2x16xf32>
    %314 = vector.shape_cast %313 : vector<2x16xf32> to vector<2x16x1xf32>
    %cst_152 = arith.constant 3.200000e+01 : f32
    %315 = vector.broadcast %cst_152 : f32 to vector<2x16x1xf32>
    %316 = arith.divf %314, %315 : vector<2x16x1xf32>
    %317 = vector.broadcast %316 : vector<2x16x1xf32> to vector<2x16x32xf32>
    %318 = arith.subf %306, %317 : vector<2x16x32xf32>
    %319 = arith.mulf %318, %318 : vector<2x16x32xf32>
    %cst_153 = arith.constant dense<0.000000e+00> : vector<2x16xf32>
    %320 = vector.multi_reduction <add>, %319, %cst_153 [2] : vector<2x16x32xf32> to vector<2x16xf32>
    %321 = vector.shape_cast %320 : vector<2x16xf32> to vector<2x16x1xf32>
    %cst_154 = arith.constant 3.200000e+01 : f32
    %322 = vector.broadcast %cst_154 : f32 to vector<2x16x1xf32>
    %323 = arith.divf %321, %322 : vector<2x16x1xf32>
    %cst_155 = arith.constant 9.99999974E-6 : f32
    %324 = vector.broadcast %cst_155 : f32 to vector<2x16x1xf32>
    %325 = arith.addf %323, %324 : vector<2x16x1xf32>
    %326 = math.rsqrt %325 : vector<2x16x1xf32>
    %327 = vector.broadcast %326 : vector<2x16x1xf32> to vector<2x16x32xf32>
    %328 = arith.mulf %318, %327 : vector<2x16x32xf32>
    %329 = vector.shape_cast %311 : vector<1x32xf32> to vector<1x1x32xf32>
    %330 = vector.broadcast %329 : vector<1x1x32xf32> to vector<2x16x32xf32>
    %331 = arith.mulf %328, %330 : vector<2x16x32xf32>
    %332 = vector.shape_cast %312 : vector<1x32xf32> to vector<1x1x32xf32>
    %333 = vector.broadcast %332 : vector<1x1x32xf32> to vector<2x16x32xf32>
    %334 = arith.addf %331, %333 : vector<2x16x32xf32>
    %335 = vector.shape_cast %334 : vector<2x16x32xf32> to vector<32x32xf32>
    %c0_156 = arith.constant 0 : index
    %c0_157 = arith.constant 0 : index
    %336 = vector.load %arg17[%c0_156, %c0_157] : memref<32x128xf32, #tpu.memory_space<vmem>>, vector<32x128xf32>
    %cst_158 = arith.constant dense<0.000000e+00> : vector<32x128xf32>
    %337 = tpu.matmul %335, %336, %cst_158 {dimension_numbers = #tpu.dot_dimension_numbers<[1], [0], [0], [1], [0, 0, 1, 1], [], []>} : vector<32x32xf32>, vector<32x128xf32>, vector<32x128xf32> -> vector<32x128xf32>
    %c0_159 = arith.constant 0 : index
    %c0_160 = arith.constant 0 : index
    %338 = vector.load %arg18[%c0_159, %c0_160] : memref<32x128xf32, #tpu.memory_space<vmem>>, vector<32x128xf32>
    tpu.vector_store %arg18[%c0_159, %c0_160], %337 {strides = array<i32>} : memref<32x128xf32, #tpu.memory_space<vmem>>, vector<32x128xf32>,
    return
  }
}

</mosaic_0001>

<bundles_post_ra>
// kernel: tpu_custom_call.1
= control target key start
LH: loop header
LB: loop body
LE: loop exit
PB: predicated region body
PF: predicated region fallthrough
CT: control target
= control target key end

     0   :  { %s4899_s0 = inlined_call_operand.vmem [shape: f32[2,16,32], index: 0, kind: input, shape index: {}]   ;;  %s4900_s1 = inlined_call_operand.vmem [shape: f32[2,16,16], index: 1, kind: input, shape index: {}]   ;;  %s4901_s2 = inlined_call_operand.vmem [shape: f32[2,2,16,32], index: 2, kind: input, shape index: {}]   ;;  %s4902_s3 = inlined_call_operand.vmem [shape: f32[2,1,32], index: 3, kind: input, shape index: {}]   ;;  %s4903_s4 = inlined_call_operand.vmem [shape: f32[2,1,32], index: 4, kind: input, shape index: {}]   ;;  %s4904_s5 = inlined_call_operand.vmem [shape: f32[2,32,96], index: 5, kind: input, shape index: {}]   ;;  %s4905_s6 = inlined_call_operand.vmem [shape: f32[2,1,96], index: 6, kind: input, shape index: {}]   ;;  %s4906_s7 = inlined_call_operand.vmem [shape: f32[2,32,32], index: 7, kind: input, shape index: {}]   ;;  %s4907_s8 = inlined_call_operand.vmem [shape: f32[2,1,32], index: 8, kind: input, shape index: {}]   ;;  %s4908_s9 = inlined_call_operand.vmem [shape: f32[2,1,32], index: 9, kind: input, shape index: {}]   ;;  %s4909_s10 = inlined_call_operand.vmem [shape: f32[2,1,32], index: 10, kind: input, shape index: {}]   ;;  %s4910_s11 = inlined_call_operand.vmem [shape: f32[2,32,128], index: 11, kind: input, shape index: {}]   ;;  %s4911_s12 = inlined_call_operand.vmem [shape: f32[2,1,128], index: 12, kind: input, shape index: {}]   ;;  %s4912_s13 = inlined_call_operand.vmem [shape: f32[2,128,32], index: 13, kind: input, shape index: {}]   ;;  %s4913_s14 = inlined_call_operand.vmem [shape: f32[2,1,32], index: 14, kind: input, shape index: {}]   ;;  %s4914_s15 = inlined_call_operand.vmem [shape: f32[1,32], index: 15, kind: input, shape index: {}]   ;;  %s4915_s16 = inlined_call_operand.vmem [shape: f32[1,32], index: 16, kind: input, shape index: {}]   ;;  %s4916_s17 = inlined_call_operand.hbm [shape: f32[32,128], index: 17, kind: input, shape index: {}]   ;;  %s4917_s18 = inlined_call_operand.hbm [shape: f32[32,128], index: 18, kind: output, shape index: {0}]   ;;  %s4918_s19 = inlined_call_operand.hbm [shape: f32[2,2,8,32], index: 19, kind: output, shape index: {1}]  }
   0x1   :  { %4929 = sst [smem:[#allocation11_spill]] %s4899_s0 }
   0x2   :  { %4930 = sst [smem:[#allocation12_spill]] %s4900_s1 }
   0x3   :  { %4931 = sst [smem:[#allocation13_spill]] %s4901_s2 }
   0x4   :  { %4932 = sst [smem:[#allocation14_spill]] %s4902_s3 }
   0x5   :  { %25 = vsyncpa [#allocation3], 0 }
   0x6   :  { %26 = vsyncpa [#allocation4], 0 }
   0x7   :  { %27 = vsyncpa [#allocation7], 0  ;;  %s4040_s0 = smov [#allocation2]  }
   0x8   :  { %s67_s30 = sshll.u32 %s4040_s0, 4  ;;  %s68_s30 = int_to_ptr.vmem [resolvable:$true] %s67_s30 }
   0x9   :  { %s3982_s20 = scalar_lea.vmem %s68_s30, 512  ;;  %p3987_p1 = scmp.lt.s32.totalorder %s68_s30, %s68_s30 }
   0xa   :  { %p3983_p0 = scmp.ne.s32.totalorder %s68_s30, %s3982_s20  ;;  %p3988_p2 = scmp.lt.s32.totalorder %s3982_s20, %s3982_s20 }
   0xc   :  { %p3989_p3 = por %p3988_p2, %p3987_p1 }
   0xe   :  { %p3990_p4 = pnand %p3989_p3, %p3983_p0 }
  0x10   :  { %3993 = shalt.err (!%p3990_p4)
}
  0x11   :  { %s4923_s21 = smov 128   ;;  %s4925_s1 = smov 8  }
  0x12   :  { %73 = dma.hbm_to_vmem [thread:$0]  %s4916_s17, 512, %s68_s30, [#allocation3], %s4923_s21, %s4923_s21, %s4925_s1  }
  0x13   :  { %4034 = dma.done.wait [#allocation3], 512  }
  0x14   :  { %4035 = vsyncadd [#allocation3], 4294966784  ;;  %v85_v0 = vlaneseq  ;;  %vm108_vm1 = vcmask 261120   ;;  %s4933_s25 = sld [smem:[#allocation11_spill]]  ;;  %v185_v40 = vld [vmem:[%s4904_s5 + $0x18] sm:$0xff]  ;;  %v184_v41 = vld [vmem:[%s4904_s5 + $0x10] sm:$0xff] }
  0x15   :  { %s4934_s27 = sld [smem:[#allocation13_spill]]  ;;  %3553 = vmatprep.subr.mxu1 %v185_v40  ;;  %v183_v42 = vld [vmem:[%s4904_s5 + $0x8] sm:$0xff]  ;;  %v182_v43 = vld [vmem:[%s4904_s5] sm:$0xff]  ;;  %vm296_vm5 = vcmask 130048   ;;  %s4043_s28 = smov 96  }
  0x16   :  { %v4157_v1 = vshrl.u32 %v85_v0, 7  ;;  %3554 = vmatpush3.msra.mxu1 %v185_v40  ;;  %s4937_s24 = sld [smem:[#allocation14_spill]]  ;;  %v3260_v59 = vld [vmem:[%s4903_s4] ss:$0 sm:$0xff]  ;;  %s4045_s17 = smov 64  }
  0x17   :  { %3555 = vmatprep.subr.mxu1 %v184_v41  ;;  %s4938_s30 = sld [smem:[#allocation12_spill]]  ;;  %s4046_s29 = smov 112  }
  0x18   :  { %v87_v2 = vadd.s32 8, %v4157_v1  ;;  %vm88_vm0 = vcmp.lt.s32.totalorder %v4157_v1, 2  ;;  %3556 = vmatpush3.msra.mxu1 %v184_v41  ;;  %s4047_s0 = smov 48   ;;  %s4927_s20 = smov 16  }
  0x19   :  { %3557 = vmatprep.subr.mxu1 %v183_v42 }
  0x1a   :  { %vm91_vm2 = vcmp.ge.s32.totalorder %v87_v2, 10  ;;  %vm93_vm3 = vcmp.lt.s32.totalorder %v87_v2, 12  ;;  %v77_v3 = vld [vmem:[%s4933_s25] sm:$0xff]  ;;  %v79_v5 = vld [vmem:[%s4933_s25 + $0x10] sm:$0xff]  ;;  %v78_v8 = vld [vmem:[%s4933_s25 + $0x8] sm:$0xff]  ;;  %3558 = vmatpush3.msra.mxu1 %v183_v42 }
  0x1b   :  { %v98_v4 = vld [vmem:[%s4934_s27] sm:$0xff]  ;;  %v100_v7 = vld [vmem:[%s4934_s27 + $0x10] sm:$0xff]  ;;  %vm4180_vm4 = vmand %vm91_vm2, %vm93_vm3  ;;  %3559 = vmatprep.subr.mxu1 %v182_v43 }
  0x1c   :  { %v4172_v6 = vsel %vm88_vm0, %v98_v4, %v77_v3  ;;  %v4188_v11 = vsel %vm88_vm0, %v100_v7, %v79_v5  ;;  %v99_v12 = vld [vmem:[%s4934_s27 + $0x8] sm:$0xff]  ;;  %v80_v13 = vld [vmem:[%s4933_s25 + $0x18] sm:$0xff]  ;;  %3560 = vmatpush3.msra.mxu1 %v182_v43  ;;  %v3259_v57 = vld [vmem:[%s4937_s24] ss:$0 sm:$0xff]  ;;  %s4044_s25 = smov 80  }
  0x1d   :  { %v109_v10 = vsel %vm108_vm1, %v4172_v6, 0.0  ;;  %v101_v14 = vld [vmem:[%s4934_s27 + $0x18] sm:$0xff]  ;;  %v115_v15 = vsel %vm108_vm1, %v4188_v11, 0.0  ;;  %v4203_v16 = vsel %vm4180_vm4, %v99_v12, %v78_v8  ;;  %v4295_v41 = vld [vmem:[%s4938_s30 + $0x10] sm:$0xff] }
  0x1e   :  { %110 = vadd.xlane.f32.xlu0 %v109_v10  ;;  %v4207_v17 = vsel %vm4180_vm4, %v101_v14, %v80_v13  ;;  %116 = vadd.xlane.f32.xlu1 %v115_v15  ;;  %v112_v18 = vsel %vm108_vm1, %v4203_v16, 0.0  ;;  %v3261_v14 = vld [vmem:[%s4905_s6] ss:$0 sm:$0xff] }
  0x1f   :  { %v118_v19 = vsel %vm108_vm1, %v4207_v17, 0.0 }
  0x22   :  { %113 = vadd.xlane.f32.xlu0 %v112_v18  ;;  %119 = vadd.xlane.f32.xlu1 %v118_v19 }
  0xa7   :  { %v111_v20 = vpop.xlane.xlu0 %110  ;;  %v117_v22 = vpop.xlane.xlu1 %116 }
  0xa8   :  { %v122_v21 = vmul.f32 0.03125, %v111_v20  ;;  %v124_v23 = vmul.f32 0.03125, %v117_v22 }
  0xaa   :  { %v126_v24 = vsub.f32 %v4172_v6, %v122_v21  ;;  %v128_v25 = vsub.f32 %v4188_v11, %v124_v23 }
  0xab   :  { %v114_v26 = vpop.xlane.xlu0 %113  ;;  %v120_v28 = vpop.xlane.xlu1 %119 }
  0xac   :  { %v123_v27 = vmul.f32 0.03125, %v114_v26  ;;  %v130_v29 = vmul.f32 %v126_v24, %v126_v24  ;;  %v125_v30 = vmul.f32 0.03125, %v120_v28  ;;  %v132_v31 = vmul.f32 %v128_v25, %v128_v25 }
  0xae   :  { %v127_v32 = vsub.f32 %v4203_v16, %v123_v27  ;;  %v134_v33 = vsel %vm108_vm1, %v130_v29, 0.0  ;;  %v129_v34 = vsub.f32 %v4207_v17, %v125_v30  ;;  %v140_v35 = vsel %vm108_vm1, %v132_v31, 0.0  ;;  %v4281_v30 = vld [vmem:[%s4938_s30 + $0x8] sm:$0xff] }
  0xaf   :  { %135 = vadd.xlane.f32.xlu0 %v134_v33  ;;  %v4286_v33 = vld [vmem:[%s4938_s30] sm:$0xff] }
  0xb0   :  { %v131_v36 = vmul.f32 %v127_v32, %v127_v32  ;;  %v133_v37 = vmul.f32 %v129_v34, %v129_v34 }
  0xb2   :  { %v137_v38 = vsel %vm108_vm1, %v131_v36, 0.0  ;;  %v143_v39 = vsel %vm108_vm1, %v133_v37, 0.0 }
  0xb3   :  { %141 = vadd.xlane.f32.xlu0 %v140_v35  ;;  %138 = vadd.xlane.f32.xlu1 %v137_v38 }
  0xb7   :  { %144 = vadd.xlane.f32.xlu1 %v143_v39 }
 0x138   :  { %v136_v44 = vpop.xlane.xlu0 %135 }
 0x139   :  { %v146_v45 = vmul.f32 0.03125, %v136_v44  ;;  %v4300_v44 = vld [vmem:[%s4938_s30 + $0x18] sm:$0xff] }
 0x13b   :  { %v150_v46 = vadd.f32 1e-05, %v146_v45 }
 0x13c   :  { %v139_v47 = vpop.xlane.xlu1 %138  ;;  %v142_v48 = vpop.xlane.xlu0 %141 }
 0x13d   :  { %3850 = vrsqrt.f32 %v150_v46  ;;  %v147_v49 = vmul.f32 0.03125, %v139_v47  ;;  %v148_v50 = vmul.f32 0.03125, %v142_v48 }
 0x13f   :  { %v151_v51 = vadd.f32 1e-05, %v147_v49  ;;  %v152_v52 = vadd.f32 1e-05, %v148_v50 }
 0x140   :  { %v145_v53 = vpop.xlane.xlu1 %144 }
 0x141   :  { %3852 = vrsqrt.f32 %v151_v51  ;;  %v149_v54 = vmul.f32 0.03125, %v145_v53 }
 0x142   :  { %3854 = vrsqrt.f32 %v152_v52 }
 0x143   :  { %v153_v55 = vadd.f32 1e-05, %v149_v54 }
 0x145   :  { %3856 = vrsqrt.f32 %v153_v55 }
 0x14a   :  { %v3851_v56 = vpop.eup %3850 }
 0x14b   :  { %v158_v58 = vmul.f32 %v3851_v56, %v126_v24 }
 0x14d   :  { %v168_v60 = vmul.f32 %v3259_v57, %v158_v58 }
 0x14e   :  { %v3853_v61 = vpop.eup %3852 }
 0x14f   :  { %v3855_v62 = vpop.eup %3854  ;;  %v178_v63 = vadd.f32 %v3260_v59, %v168_v60  ;;  %v159_v0 = vmul.f32 %v3853_v61, %v127_v32 }
 0x150   :  { %v160_v2 = vmul.f32 %v3855_v62, %v128_v25 }
 0x151   :  { %3561 = vmatprep.mubr.msk.f32.mxu1 %vm108_vm1, %v178_v63  ;;  %v169_v3 = vmul.f32 %v3259_v57, %v159_v0 }
 0x152   :  { %v3857_v4 = vpop.eup %3856  ;;  %v170_v5 = vmul.f32 %v3259_v57, %v160_v2 }
 0x153   :  { %v179_v7 = vadd.f32 %v3260_v59, %v169_v3  ;;  %v161_v8 = vmul.f32 %v3857_v4, %v129_v34 }
 0x154   :  { %v180_v10 = vadd.f32 %v3260_v59, %v170_v5 }
 0x155   :  { %3562 = vmatmul.mubr.msk.f32.vlgmr.msra.gmra.mxu1 %vm108_vm1, %v179_v7  ;;  %v171_v12 = vmul.f32 %v3259_v57, %v161_v8 }
 0x156   :  { %3564 = vmatprep.mubr.msk.f32.mxu1 %vm108_vm1, %v180_v10 }
 0x157   :  { %v181_v13 = vadd.f32 %v3260_v59, %v171_v12 }
 0x159   :  { %3565 = vmatmul.mubr.msk.f32.gmra.mxu1 %vm108_vm1, %v181_v13 }
 0x215   :  { %v3563_v15 = vpop.f32.mrf.mxu1 }
 0x216   :  { %v4246_v18 = vadd.f32 %v3563_v15, %v3261_v14 }
 0x217   :  { %v271_v19 = vpop.f32.mrf.mxu1 }
 0x218   :  { %v4248_v20 = vadd.f32 %v3261_v14, %v271_v19  ;;  %294 = vrot.lane.b32.xlu0 %v4246_v18, %s4043_s28 }
 0x219   :  { %v3566_v21 = vpop.f32.mrf.mxu1 }
 0x21a   :  { %292 = vrot.lane.b32.xlu1 %v4248_v20, %s4043_s28  ;;  %3571 = vmatprep.mubr.msk.f32.mxu1 %vm296_vm5, %v4248_v20  ;;  %v4256_v23 = vadd.f32 %v3566_v21, %v3261_v14 }
 0x21b   :  { %v281_v22 = vpop.f32.mrf.mxu1 }
 0x21c   :  { %v4258_v24 = vadd.f32 %v3261_v14, %v281_v22 }
 0x21e   :  { %384 = vrot.lane.b32.xlu1 %v4256_v23, %s4043_s28  ;;  %3578 = vmatprep.mubr.msk.f32.mxu0 %vm296_vm5, %v4258_v24 }
 0x222   :  { %382 = vrot.lane.b32.xlu1 %v4258_v24, %s4043_s28 }
 0x28a   :  { %v295_v25 = vpop.permute.xlu0 %294 }
 0x28b   :  { %3567 = vmatprep.subr.msk.mxu1 %vm296_vm5, %v295_v25 }
 0x28c   :  { %v293_v26 = vpop.permute.xlu1 %292  ;;  %3568 = vmatpush3.xpose.msk.msra.mxu1 %vm296_vm5, %v295_v25 }
 0x28d   :  { %3569 = vmatprep.subr.msk.mxu1 %vm296_vm5, %v293_v26 }
 0x290   :  { %v385_v27 = vpop.permute.xlu1 %384  ;;  %3570 = vmatpush3.xpose.msk.msra.mxu1 %vm296_vm5, %v293_v26 }
 0x291   :  { %3574 = vmatprep.subr.msk.mxu0 %vm296_vm5, %v385_v27 }
 0x292   :  { %3575 = vmatpush3.xpose.msk.msra.mxu0 %vm296_vm5, %v385_v27 }
 0x293   :  { %3572 = vmatmul.mubr.msk.f32.vlgmr.msra.gmra.mxu1 %vm296_vm5, %v4246_v18 }
 0x294   :  { %v383_v28 = vpop.permute.xlu1 %382 }
 0x295   :  { %3576 = vmatprep.subr.msk.mxu0 %vm296_vm5, %v383_v28 }
 0x296   :  { %3577 = vmatpush3.xpose.msk.msra.mxu0 %vm296_vm5, %v383_v28 }
 0x299   :  { %3579 = vmatmul.mubr.msk.f32.vlgmr.msra.gmra.mxu0 %vm296_vm5, %v4256_v23 }
 0x353   :  { %v3573_v29 = vpop.f32.mrf.mxu1 }
 0x354   :  { %v470_v31 = vmul.f32 0.25, %v3573_v29 }
 0x355   :  { %v371_v32 = vpop.f32.mrf.mxu1 }
 0x356   :  { %v469_v34 = vmul.f32 0.25, %v371_v32  ;;  %v474_v35 = vadd.f32 %v470_v31, %v4281_v30 }
 0x358   :  { %v480_v36 = vsel %vm296_vm5, %v474_v35, -inf  ;;  %v473_v37 = vadd.f32 %v469_v34, %v4286_v33 }
 0x359   :  { %v3580_v38 = vpop.f32.mrf.mxu0  ;;  %481 = vmax.xlane.f32.xlu1 %v480_v36 }
 0x35a   :  { %v477_v39 = vsel %vm296_vm5, %v473_v37, -inf  ;;  %v472_v42 = vmul.f32 0.25, %v3580_v38 }
 0x35b   :  { %v460_v40 = vpop.f32.mrf.mxu0  ;;  %478 = vmax.xlane.f32.xlu0 %v477_v39 }
 0x35c   :  { %v471_v43 = vmul.f32 0.25, %v460_v40  ;;  %v476_v47 = vadd.f32 %v472_v42, %v4300_v44 }
 0x35e   :  { %v475_v45 = vadd.f32 %v471_v43, %v4295_v41  ;;  %v486_v48 = vsel %vm296_vm5, %v476_v47, -inf }
 0x360   :  { %v483_v46 = vsel %vm296_vm5, %v475_v45, -inf }
 0x361   :  { %484 = vmax.xlane.f32.xlu0 %v483_v46 }
 0x365   :  { %487 = vmax.xlane.f32.xlu0 %v486_v48 }
 0x36a   :  { %701 = vrot.lane.b32.xlu1 %v4246_v18, %s4044_s25 }
 0x36e   :  { %521 = vrot.lane.b32.xlu1 %v4248_v20, %s4045_s17 }
 0x372   :  { %610 = vrot.lane.b32.xlu1 %v4256_v23, %s4045_s17 }
 0x376   :  { %608 = vrot.lane.b32.xlu1 %v4258_v24, %s4045_s17 }
 0x37a   :  { %697 = vrot.lane.b32.xlu1 %v4246_v18, %s4046_s29 }
 0x37b   :  { %523 = vrot.lane.b32.xlu0 %v4246_v18, %s4045_s17 }
 0x37f   :  { %699 = vrot.lane.b32.xlu0 %v4248_v20, %s4044_s25 }
 0x383   :  { %695 = vrot.lane.b32.xlu0 %v4248_v20, %s4046_s29 }
 0x3e2   :  { %v482_v49 = vpop.xlane.xlu1 %481 }
 0x3e3   :  { %v490_v50 = vsub.f32 %v474_v35, %v482_v49 }
 0x3e4   :  { %v479_v51 = vpop.xlane.xlu0 %478 }
 0x3e5   :  { %v495_v52 = vmul.f32 1.442695, %v490_v50  ;;  %v489_v53 = vsub.f32 %v473_v37, %v479_v51 }
 0x3e6   :  { %v702_v54 = vpop.permute.xlu1 %701 }
 0x3e7   :  { %3858 = vpow2.f32 %v495_v52  ;;  %v493_v55 = vmul.f32 1.442695, %v489_v53  ;;  %3595 = vmatprep.subr.msk.mxu0 %vm296_vm5, %v702_v54 }
 0x3e8   :  { %3596 = vmatpush3.xpose.msk.msra.mxu0 %vm296_vm5, %v702_v54 }
 0x3e9   :  { %3860 = vpow2.f32 %v493_v55 }
 0x3ea   :  { %v522_v56 = vpop.permute.xlu1 %521  ;;  %v485_v57 = vpop.xlane.xlu0 %484 }
 0x3eb   :  { %v491_v58 = vsub.f32 %v475_v45, %v485_v57 }
 0x3ed   :  { %v497_v59 = vmul.f32 1.442695, %v491_v58 }
 0x3ee   :  { %v488_v60 = vpop.xlane.xlu0 %487  ;;  %v611_v61 = vpop.permute.xlu1 %610 }
 0x3ef   :  { %3862 = vpow2.f32 %v497_v59  ;;  %v492_v62 = vsub.f32 %v476_v47, %v488_v60 }
 0x3f1   :  { %v499_v63 = vmul.f32 1.442695, %v492_v62 }
 0x3f2   :  { %v524_v0 = vpop.permute.xlu0 %523  ;;  %v609_v3 = vpop.permute.xlu1 %608 }
 0x3f3   :  { %3864 = vpow2.f32 %v499_v63  ;;  %3581 = vmatprep.subr.mxu1 %v524_v0 }
 0x3f4   :  { %v3859_v2 = vpop.eup %3858  ;;  %3582 = vmatpush3.msra.mxu1 %v524_v0 }
 0x3f5   :  { %3583 = vmatprep.subr.mxu1 %v522_v56  ;;  %v504_v4 = vsel %vm296_vm5, %v3859_v2, 0.0 }
 0x3f6   :  { %v3861_v5 = vpop.eup %3860  ;;  %505 = vadd.xlane.f32.xlu1 %v504_v4  ;;  %3584 = vmatpush3.msra.mxu1 %v522_v56  ;;  %v700_v7 = vpop.permute.xlu0 %699 }
 0x3f7   :  { %3588 = vmatprep.subr.mxu1 %v611_v61  ;;  %3597 = vmatprep.subr.msk.mxu0 %vm296_vm5, %v700_v7  ;;  %v501_v8 = vsel %vm296_vm5, %v3861_v5, 0.0  ;;  %v698_v12 = vpop.permute.xlu1 %697 }
 0x3f8   :  { %502 = vadd.xlane.f32.xlu0 %v501_v8  ;;  %3598 = vmatpush3.xpose.msk.msra.mxu0 %vm296_vm5, %v700_v7 }
 0x3fa   :  { %v696_v10 = vpop.permute.xlu0 %695 }
 0x3fb   :  { %3599 = vmatprep.mubr.msk.f32.mxu0 %vm296_vm5, %v696_v10 }
 0x3fc   :  { %v3863_v13 = vpop.eup %3862  ;;  %3600 = vmatmul.mubr.msk.f32.vlgmr.msra.gmra.mxu0 %vm296_vm5, %v698_v12 }
 0x3fd   :  { %v507_v14 = vsel %vm296_vm5, %v3863_v13, 0.0 }
 0x3fe   :  { %508 = vadd.xlane.f32.xlu0 %v507_v14 }
 0x400   :  { %v3865_v15 = vpop.eup %3864 }
 0x401   :  { %v510_v19 = vsel %vm296_vm5, %v3865_v15, 0.0 }
 0x402   :  { %511 = vadd.xlane.f32.xlu1 %v510_v19 }
 0x413   :  { %790 = vrot.lane.b32.xlu1 %v4258_v24, %s4044_s25 }
 0x414   :  { %792 = vrot.lane.b32.xlu0 %v4256_v23, %s4044_s25 }
 0x417   :  { %788 = vrot.lane.b32.xlu1 %v4256_v23, %s4046_s29 }
 0x418   :  { %786 = vrot.lane.b32.xlu0 %v4258_v24, %s4046_s29 }
 0x47f   :  { %v506_v21 = vpop.xlane.xlu1 %505 }
 0x480   :  { %3866 = vrcp.f32 %v506_v21 }
 0x481   :  { %v503_v22 = vpop.xlane.xlu0 %502 }
 0x482   :  { %3868 = vrcp.f32 %v503_v22 }
 0x487   :  { %v509_v25 = vpop.xlane.xlu0 %508 }
 0x488   :  { %3870 = vrcp.f32 %v509_v25 }
 0x48b   :  { %v512_v26 = vpop.xlane.xlu1 %511  ;;  %v793_v34 = vpop.permute.xlu0 %792 }
 0x48c   :  { %3872 = vrcp.f32 %v512_v26 }
 0x48d   :  { %v3867_v27 = vpop.eup %3866 }
 0x48e   :  { %v518_v31 = vmul.f32 %v3867_v27, %v3859_v2 }
 0x48f   :  { %v3869_v28 = vpop.eup %3868  ;;  %v787_v38 = vpop.permute.xlu0 %786 }
 0x490   :  { %v517_v29 = vmul.f32 %v3869_v28, %v3861_v5  ;;  %v791_v39 = vpop.permute.xlu1 %790 }
 0x492   :  { %3585 = vmatprep.mubr.msk.f32.mxu1 %vm296_vm5, %v517_v29 }
 0x493   :  { %3586 = vmatmul.mubr.msk.f32.vlgmr.msra.gmra.mxu1 %vm296_vm5, %v518_v31 }
 0x494   :  { %3589 = vmatpush3.msra.mxu1 %v611_v61  ;;  %v789_v40 = vpop.permute.xlu1 %788 }
 0x495   :  { %v3871_v32 = vpop.eup %3870  ;;  %3590 = vmatprep.subr.mxu1 %v609_v3 }
 0x496   :  { %3591 = vmatpush3.msra.mxu1 %v609_v3  ;;  %v519_v35 = vmul.f32 %v3871_v32, %v3863_v13 }
 0x497   :  { %3602 = vmatprep.subr.msk.mxu1 %vm296_vm5, %v793_v34 }
 0x498   :  { %3592 = vmatprep.mubr.msk.f32.mxu1 %vm296_vm5, %v519_v35 }
 0x499   :  { %v3873_v36 = vpop.eup %3872 }
 0x49a   :  { %v520_v37 = vmul.f32 %v3873_v36, %v3865_v15 }
 0x49c   :  { %3593 = vmatmul.mubr.msk.f32.vlgmr.msra.gmra.mxu1 %vm296_vm5, %v520_v37 }
 0x49d   :  { %3603 = vmatpush3.xpose.msk.msra.mxu1 %vm296_vm5, %v793_v34  ;;  %3606 = vmatprep.mubr.msk.f32.mxu1 %vm296_vm5, %v787_v38 }
 0x49e   :  { %3604 = vmatprep.subr.msk.mxu1 %vm296_vm5, %v791_v39 }
 0x4a1   :  { %3605 = vmatpush3.xpose.msk.msra.mxu1 %vm296_vm5, %v791_v39  ;;  %v1126_v39 = vld [vmem:[%s4906_s7 + $0x18] sm:$0xff] }
 0x4a2   :  { %3623 = vmatprep.subr.mxu0 %v1126_v39 }
 0x4a3   :  { %3624 = vmatpush3.msra.mxu0 %v1126_v39 }
 0x4a4   :  { %3607 = vmatmul.mubr.msk.f32.vlgmr.msra.gmra.mxu1 %vm296_vm5, %v789_v40  ;;  %v1125_v40 = vld [vmem:[%s4906_s7 + $0x10] sm:$0xff] }
 0x4a5   :  { %3625 = vmatprep.subr.mxu0 %v1125_v40 }
 0x4a6   :  { %3626 = vmatpush3.msra.mxu0 %v1125_v40 }
 0x4bc   :  { %v3601_v42 = vpop.f32.mrf.mxu0 }
 0x4bd   :  { %v878_v43 = vmul.f32 0.25, %v3601_v42  ;;  %v1124_v42 = vld [vmem:[%s4906_s7 + $0x8] sm:$0xff] }
 0x4be   :  { %v777_v45 = vpop.f32.mrf.mxu0  ;;  %3627 = vmatprep.subr.mxu0 %v1124_v42 }
 0x4bf   :  { %v877_v46 = vmul.f32 0.25, %v777_v45  ;;  %v882_v47 = vadd.f32 %v878_v43, %v4281_v30  ;;  %3628 = vmatpush3.msra.mxu0 %v1124_v42  ;;  %v1123_v43 = vld [vmem:[%s4906_s7] sm:$0xff] }
 0x4c0   :  { %3629 = vmatprep.subr.mxu0 %v1123_v43 }
 0x4c1   :  { %v888_v48 = vsel %vm296_vm5, %v882_v47, -inf  ;;  %v881_v49 = vadd.f32 %v877_v46, %v4286_v33  ;;  %3630 = vmatpush3.msra.mxu0 %v1123_v43 }
 0x4c2   :  { %889 = vmax.xlane.f32.xlu1 %v888_v48 }
 0x4c3   :  { %v885_v50 = vsel %vm296_vm5, %v881_v49, -inf }
 0x4c4   :  { %886 = vmax.xlane.f32.xlu0 %v885_v50 }
 0x54b   :  { %v890_v51 = vpop.xlane.xlu1 %889 }
 0x54c   :  { %v898_v52 = vsub.f32 %v882_v47, %v890_v51 }
 0x54d   :  { %v887_v54 = vpop.xlane.xlu0 %886 }
 0x54e   :  { %v903_v53 = vmul.f32 1.442695, %v898_v52  ;;  %v897_v56 = vsub.f32 %v881_v49, %v887_v54 }
 0x550   :  { %3874 = vpow2.f32 %v903_v53  ;;  %v901_v33 = vmul.f32 1.442695, %v897_v56 }
 0x552   :  { %3876 = vpow2.f32 %v901_v33 }
 0x553   :  { %v4354_v55 = vpop.f32.mrf.mxu1 }
 0x555   :  { %v4356_v57 = vpop.f32.mrf.mxu1 }
 0x55c   :  { %v4358_v30 = vpop.f32.mrf.mxu1 }
 0x55d   :  { %v3875_v58 = vpop.eup %3874 }
 0x55e   :  { %v912_v59 = vsel %vm296_vm5, %v3875_v58, 0.0  ;;  %v4361_v60 = vpop.f32.mrf.mxu1 }
 0x55f   :  { %913 = vadd.xlane.f32.xlu1 %v912_v59  ;;  %v3877_v7 = vpop.eup %3876 }
 0x560   :  { %v909_v8 = vsel %vm296_vm5, %v3877_v7, 0.0 }
 0x564   :  { %v3608_v61 = vpop.f32.mrf.mxu1 }
 0x565   :  { %v880_v63 = vmul.f32 0.25, %v3608_v61 }
 0x566   :  { %v868_v62 = vpop.f32.mrf.mxu1 }
 0x567   :  { %v879_v0 = vmul.f32 0.25, %v868_v62  ;;  %v884_v4 = vadd.f32 %v880_v63, %v4300_v44 }
 0x569   :  { %v883_v2 = vadd.f32 %v879_v0, %v4295_v41  ;;  %v894_v5 = vsel %vm296_vm5, %v884_v4, -inf }
 0x56b   :  { %v891_v3 = vsel %vm296_vm5, %v883_v2, -inf }
 0x56c   :  { %892 = vmax.xlane.f32.xlu0 %v891_v3 }
 0x570   :  { %895 = vmax.xlane.f32.xlu0 %v894_v5 }
 0x574   :  { %910 = vadd.xlane.f32.xlu0 %v909_v8 }
 0x5e8   :  { %v914_v28 = vpop.xlane.xlu1 %913 }
 0x5f5   :  { %v893_v10 = vpop.xlane.xlu0 %892 }
 0x5f6   :  { %v899_v12 = vsub.f32 %v883_v2, %v893_v10 }
 0x5f8   :  { %v905_v13 = vmul.f32 1.442695, %v899_v12 }
 0x5f9   :  { %v896_v14 = vpop.xlane.xlu0 %895 }
 0x5fa   :  { %3878 = vpow2.f32 %v905_v13  ;;  %v900_v15 = vsub.f32 %v884_v4, %v896_v14 }
 0x5fc   :  { %v907_v19 = vmul.f32 1.442695, %v900_v15 }
 0x5fd   :  { %v911_v41 = vpop.xlane.xlu0 %910 }
 0x5fe   :  { %3880 = vpow2.f32 %v907_v19 }
 0x5ff   :  { %3882 = vrcp.f32 %v911_v41 }
 0x600   :  { %3884 = vrcp.f32 %v914_v28 }
 0x607   :  { %v3879_v21 = vpop.eup %3878 }
 0x608   :  { %v915_v44 = vsel %vm296_vm5, %v3879_v21, 0.0 }
 0x609   :  { %916 = vadd.xlane.f32.xlu0 %v915_v44 }
 0x60b   :  { %v3881_v22 = vpop.eup %3880 }
 0x60c   :  { %v3883_v25 = vpop.eup %3882  ;;  %v918_v26 = vsel %vm296_vm5, %v3881_v22, 0.0 }
 0x60d   :  { %919 = vadd.xlane.f32.xlu1 %v918_v26  ;;  %v925_v27 = vmul.f32 %v3883_v25, %v3877_v7  ;;  %v3885_v34 = vpop.eup %3884 }
 0x60e   :  { %v926_v35 = vmul.f32 %v3885_v34, %v3875_v58  ;;  %v1312_v34 = vld [vmem:[%s4910_s11 + $0x18] sm:$0xff] }
 0x60f   :  { %3613 = vmatprep.mubr.msk.f32.mxu1 %vm296_vm5, %v925_v27 }
 0x61e   :  { %929 = vrot.lane.b32.xlu1 %v4248_v20, %s4047_s0 }
 0x61f   :  { %931 = vrot.lane.b32.xlu0 %v4246_v18, %s4047_s0 }
 0x622   :  { %1018 = vrot.lane.b32.xlu1 %v4256_v23, %s4047_s0 }
 0x626   :  { %1016 = vrot.lane.b32.xlu1 %v4258_v24, %s4047_s0 }
 0x692   :  { %v917_v29 = vpop.xlane.xlu0 %916 }
 0x693   :  { %3886 = vrcp.f32 %v917_v29 }
 0x696   :  { %v920_v31 = vpop.xlane.xlu1 %919  ;;  %v932_v32 = vpop.permute.xlu0 %931 }
 0x697   :  { %3888 = vrcp.f32 %v920_v31  ;;  %3609 = vmatprep.subr.mxu1 %v932_v32 }
 0x698   :  { %3610 = vmatpush3.msra.mxu1 %v932_v32 }
 0x69a   :  { %v930_v20 = vpop.permute.xlu1 %929 }
 0x69b   :  { %3611 = vmatprep.subr.mxu1 %v930_v20 }
 0x69c   :  { %3612 = vmatpush3.msra.mxu1 %v930_v20  ;;  %v1311_v20 = vld [vmem:[%s4910_s11 + $0x10] sm:$0xff] }
 0x69d   :  { %3614 = vmatmul.mubr.msk.f32.vlgmr.msra.gmra.mxu1 %vm296_vm5, %v926_v35  ;;  %v1310_v35 = vld [vmem:[%s4910_s11 + $0x8] sm:$0xff] }
 0x69e   :  { %v1019_v18 = vpop.permute.xlu1 %1018 }
 0x69f   :  { %3616 = vmatprep.subr.mxu1 %v1019_v18 }
 0x6a0   :  { %v3887_v23 = vpop.eup %3886  ;;  %3617 = vmatpush3.msra.mxu1 %v1019_v18  ;;  %v1309_v18 = vld [vmem:[%s4910_s11] sm:$0xff] }
 0x6a1   :  { %v927_v24 = vmul.f32 %v3887_v23, %v3879_v21 }
 0x6a2   :  { %v1017_v36 = vpop.permute.xlu1 %1016 }
 0x6a3   :  { %3618 = vmatprep.subr.mxu1 %v1017_v36  ;;  %3620 = vmatprep.mubr.msk.f32.mxu1 %vm296_vm5, %v927_v24 }
 0x6a4   :  { %v3889_v37 = vpop.eup %3888  ;;  %3619 = vmatpush3.msra.mxu1 %v1017_v36 }
 0x6a5   :  { %v928_v38 = vmul.f32 %v3889_v37, %v3881_v22  ;;  %3637 = vmatprep.subr.mxu1 %v1312_v34 }
 0x6a7   :  { %3621 = vmatmul.mubr.msk.f32.vlgmr.msra.gmra.mxu1 %vm296_vm5, %v928_v38 }
 0x6a8   :  { %3638 = vmatpush3.msra.mxu1 %v1312_v34 }
 0x6a9   :  { %3639 = vmatprep.subr.mxu1 %v1311_v20 }
 0x6aa   :  { %3640 = vmatpush3.msra.mxu1 %v1311_v20 }
 0x6ab   :  { %3641 = vmatprep.subr.mxu1 %v1310_v35 }
 0x6ac   :  { %3642 = vmatpush3.msra.mxu1 %v1310_v35 }
 0x6ad   :  { %3643 = vmatprep.subr.mxu1 %v1309_v18 }
 0x6ae   :  { %3644 = vmatpush3.msra.mxu1 %v1309_v18 }
 0x75d   :  { %v3615_v45 = vpop.f32.mrf.mxu1 }
 0x75e   :  { %1109 = vrot.lane.b32.xlu1 %v3615_v45, %s4927_s20 }
 0x75f   :  { %v1007_v46 = vpop.f32.mrf.mxu1 }
 0x760   :  { %1107 = vrot.lane.b32.xlu0 %v1007_v46, %s4927_s20 }
 0x767   :  { %v3622_v47 = vpop.f32.mrf.mxu1 }
 0x768   :  { %1113 = vrot.lane.b32.xlu1 %v3622_v47, %s4927_s20 }
 0x769   :  { %v1094_v48 = vpop.f32.mrf.mxu1 }
 0x76a   :  { %1111 = vrot.lane.b32.xlu0 %v1094_v48, %s4927_s20  ;;  %s4939_s20 = smov 16  }
 0x7d0   :  { %v1110_v49 = vpop.permute.xlu1 %1109 }
 0x7d1   :  { %v1120_v52 = vsel %vm296_vm5, %v4354_v55, %v1110_v49  ;;  %v3290_v55 = vld [vmem:[%s4907_s8] ss:$0 sm:$0xff] }
 0x7d2   :  { %v1108_v50 = vpop.permute.xlu0 %1107 }
 0x7d3   :  { %v1119_v51 = vsel %vm296_vm5, %v4356_v57, %v1108_v50  ;;  %v3295_v50 = vld [vmem:[%s4908_s9] ss:$0 sm:$0xff] }
 0x7d4   :  { %3631 = vmatprep.mubr.msk.f32.mxu0 %vm108_vm1, %v1119_v51 }
 0x7d5   :  { %3632 = vmatmul.mubr.msk.f32.vlgmr.msra.gmra.mxu0 %vm108_vm1, %v1120_v52 }
 0x7da   :  { %v1114_v53 = vpop.permute.xlu1 %1113 }
 0x7db   :  { %v1122_v58 = vsel %vm296_vm5, %v4358_v30, %v1114_v53 }
 0x7dc   :  { %v1112_v54 = vpop.permute.xlu0 %1111 }
 0x7dd   :  { %v1121_v56 = vsel %vm296_vm5, %v4361_v60, %v1112_v54  ;;  %v3296_v54 = vld [vmem:[%s4909_s10] ss:$0 sm:$0xff] }
 0x7de   :  { %3634 = vmatprep.mubr.msk.f32.mxu0 %vm108_vm1, %v1121_v56 }
 0x7df   :  { %3635 = vmatmul.mubr.msk.f32.gmra.mxu0 %vm108_vm1, %v1122_v58 }
 0x895   :  { %v3633_v57 = vpop.f32.mrf.mxu0 }
 0x896   :  { %v1218_v59 = vadd.f32 %v3633_v57, %v3290_v55 }
 0x897   :  { %v1212_v33 = vpop.f32.mrf.mxu0 }
 0x898   :  { %v4414_v61 = vadd.f32 %v1218_v59, %v4203_v16  ;;  %v1213_v62 = vadd.f32 %v3290_v55, %v1212_v33 }
 0x89a   :  { %v4417_v60 = vadd.f32 %v1213_v62, %v4172_v6  ;;  %v1240_v30 = vsel %vm108_vm1, %v4414_v61, 0.0 }
 0x89b   :  { %1241 = vadd.xlane.f32.xlu1 %v1240_v30 }
 0x89c   :  { %v1237_v63 = vsel %vm108_vm1, %v4417_v60, 0.0 }
 0x89d   :  { %1238 = vadd.xlane.f32.xlu0 %v1237_v63 }
 0x89f   :  { %v3636_v0 = vpop.f32.mrf.mxu0 }
 0x8a0   :  { %v1228_v3 = vadd.f32 %v3636_v0, %v3290_v55 }
 0x8a1   :  { %v1222_v2 = vpop.f32.mrf.mxu0 }
 0x8a2   :  { %v1223_v4 = vadd.f32 %v3290_v55, %v1222_v2  ;;  %v4427_v16 = vadd.f32 %v1228_v3, %v4207_v17  ;;  %v1468_v3 = vld [vmem:[%s4912_s13 + $0x78] sm:$0xff] }
 0x8a3   :  { %3651 = vmatprep.subr.mxu0 %v1468_v3 }
 0x8a4   :  { %v4424_v5 = vadd.f32 %v1223_v4, %v4188_v11  ;;  %v1246_v7 = vsel %vm108_vm1, %v4427_v16, 0.0  ;;  %3652 = vmatpush3.msra.mxu0 %v1468_v3  ;;  %v1467_v4 = vld [vmem:[%s4912_s13 + $0x70] sm:$0xff] }
 0x8a5   :  { %3653 = vmatprep.subr.mxu0 %v1467_v4 }
 0x8a6   :  { %v1243_v6 = vsel %vm108_vm1, %v4424_v5, 0.0  ;;  %3654 = vmatpush3.msra.mxu0 %v1467_v4 }
 0x8a7   :  { %1244 = vadd.xlane.f32.xlu0 %v1243_v6  ;;  %v1466_v6 = vld [vmem:[%s4912_s13 + $0x68] sm:$0xff] }
 0x8a8   :  { %3655 = vmatprep.subr.mxu0 %v1466_v6 }
 0x8a9   :  { %3656 = vmatpush3.msra.mxu0 %v1466_v6 }
 0x8ab   :  { %1247 = vadd.xlane.f32.xlu0 %v1246_v7  ;;  %v1465_v7 = vld [vmem:[%s4912_s13 + $0x60] sm:$0xff] }
 0x8ac   :  { %3657 = vmatprep.subr.mxu0 %v1465_v7 }
 0x8ad   :  { %3658 = vmatpush3.msra.mxu0 %v1465_v7  ;;  %v3302_v7 = vld [vmem:[%s4913_s14] ss:$0 sm:$0xff] }
 0x924   :  { %v1242_v8 = vpop.xlane.xlu1 %1241 }
 0x925   :  { %v1250_v10 = vmul.f32 0.03125, %v1242_v8  ;;  %v1464_v8 = vld [vmem:[%s4912_s13 + $0x58] sm:$0xff] }
 0x926   :  { %v1239_v12 = vpop.xlane.xlu0 %1238  ;;  %3659 = vmatprep.subr.mxu0 %v1464_v8 }
 0x927   :  { %v1254_v13 = vsub.f32 %v4414_v61, %v1250_v10  ;;  %v1249_v14 = vmul.f32 0.03125, %v1239_v12  ;;  %3660 = vmatpush3.msra.mxu0 %v1464_v8  ;;  %v1463_v10 = vld [vmem:[%s4912_s13 + $0x50] sm:$0xff]  ;;  %v1462_v12 = vld [vmem:[%s4912_s13 + $0x48] sm:$0xff] }
 0x928   :  { %3661 = vmatprep.subr.mxu0 %v1463_v10 }
 0x929   :  { %v1253_v11 = vsub.f32 %v4417_v60, %v1249_v14  ;;  %v1258_v15 = vmul.f32 %v1254_v13, %v1254_v13  ;;  %3662 = vmatpush3.msra.mxu0 %v1463_v10  ;;  %v1460_v14 = vld [vmem:[%s4912_s13 + $0x38] sm:$0xff] }
 0x92a   :  { %3663 = vmatprep.subr.mxu0 %v1462_v12 }
 0x92b   :  { %v1264_v17 = vsel %vm108_vm1, %v1258_v15, 0.0  ;;  %v1257_v19 = vmul.f32 %v1253_v11, %v1253_v11  ;;  %3664 = vmatpush3.msra.mxu0 %v1462_v12  ;;  %v1458_v15 = vld [vmem:[%s4912_s13 + $0x28] sm:$0xff] }
 0x92c   :  { %1265 = vadd.xlane.f32.xlu1 %v1264_v17  ;;  %v1457_v17 = vld [vmem:[%s4912_s13 + $0x20] sm:$0xff] }
 0x92d   :  { %v1261_v41 = vsel %vm108_vm1, %v1257_v19, 0.0  ;;  %v1456_v19 = vld [vmem:[%s4912_s13 + $0x18] sm:$0xff] }
 0x92e   :  { %1262 = vadd.xlane.f32.xlu0 %v1261_v41  ;;  %v1455_v41 = vld [vmem:[%s4912_s13 + $0x10] sm:$0xff] }
 0x930   :  { %v1245_v21 = vpop.xlane.xlu0 %1244 }
 0x931   :  { %v1251_v44 = vmul.f32 0.03125, %v1245_v21  ;;  %v1454_v21 = vld [vmem:[%s4912_s13 + $0x8] sm:$0xff] }
 0x933   :  { %v1255_v22 = vsub.f32 %v4424_v5, %v1251_v44  ;;  %v1453_v44 = vld [vmem:[%s4912_s13] sm:$0xff] }
 0x934   :  { %v1248_v25 = vpop.xlane.xlu0 %1247 }
 0x935   :  { %v1252_v26 = vmul.f32 0.03125, %v1248_v25  ;;  %v1259_v27 = vmul.f32 %v1255_v22, %v1255_v22 }
 0x937   :  { %v1256_v28 = vsub.f32 %v4427_v16, %v1252_v26  ;;  %v1267_v29 = vsel %vm108_vm1, %v1259_v27, 0.0 }
 0x938   :  { %1268 = vadd.xlane.f32.xlu0 %v1267_v29 }
 0x939   :  { %v1260_v31 = vmul.f32 %v1256_v28, %v1256_v28 }
 0x93b   :  { %v1270_v32 = vsel %vm108_vm1, %v1260_v31, 0.0 }
 0x93c   :  { %1271 = vadd.xlane.f32.xlu1 %v1270_v32 }
 0x9b5   :  { %v1266_v23 = vpop.xlane.xlu1 %1265 }
 0x9b6   :  { %v1274_v24 = vmul.f32 0.03125, %v1266_v23 }
 0x9b7   :  { %v1263_v36 = vpop.xlane.xlu0 %1262 }
 0x9b8   :  { %v1278_v37 = vadd.f32 1e-05, %v1274_v24  ;;  %v1273_v38 = vmul.f32 0.03125, %v1263_v36 }
 0x9ba   :  { %3890 = vrsqrt.f32 %v1278_v37  ;;  %v1277_v39 = vadd.f32 1e-05, %v1273_v38 }
 0x9bc   :  { %3892 = vrsqrt.f32 %v1277_v39 }
 0x9c1   :  { %v1269_v40 = vpop.xlane.xlu0 %1268 }
 0x9c2   :  { %v1275_v42 = vmul.f32 0.03125, %v1269_v40 }
 0x9c4   :  { %v1279_v43 = vadd.f32 1e-05, %v1275_v42 }
 0x9c5   :  { %v1272_v45 = vpop.xlane.xlu1 %1271 }
 0x9c6   :  { %3894 = vrsqrt.f32 %v1279_v43  ;;  %v1276_v46 = vmul.f32 0.03125, %v1272_v45 }
 0x9c7   :  { %v3891_v47 = vpop.eup %3890 }
 0x9c8   :  { %v1286_v48 = vmul.f32 %v3891_v47, %v1254_v13  ;;  %v1280_v49 = vadd.f32 1e-05, %v1276_v46  ;;  %v1461_v13 = vld [vmem:[%s4912_s13 + $0x40] sm:$0xff] }
 0x9c9   :  { %v3893_v51 = vpop.eup %3892  ;;  %3665 = vmatprep.subr.mxu0 %v1461_v13 }
 0x9ca   :  { %3896 = vrsqrt.f32 %v1280_v49  ;;  %v1285_v52 = vmul.f32 %v3893_v51, %v1253_v11  ;;  %v1296_v53 = vmul.f32 %v3295_v50, %v1286_v48  ;;  %3666 = vmatpush3.msra.mxu0 %v1461_v13  ;;  %v1459_v11 = vld [vmem:[%s4912_s13 + $0x30] sm:$0xff]  ;;  %v3304_v13 = vld [vmem:[%s4934_s27 + $0x28] sm:$0xff] }
 0x9cb   :  { %3667 = vmatprep.subr.mxu0 %v1460_v14 }
 0x9cc   :  { %v1295_v56 = vmul.f32 %v3295_v50, %v1285_v52  ;;  %v1306_v55 = vadd.f32 %v3296_v54, %v1296_v53  ;;  %3668 = vmatpush3.msra.mxu0 %v1460_v14 }
 0x9cd   :  { %3669 = vmatprep.subr.mxu0 %v1459_v11 }
 0x9ce   :  { %v1305_v58 = vadd.f32 %v3296_v54, %v1295_v56  ;;  %3670 = vmatpush3.msra.mxu0 %v1459_v11 }
 0x9cf   :  { %3671 = vmatprep.subr.mxu0 %v1458_v15 }
 0x9d0   :  { %3645 = vmatprep.mubr.msk.f32.mxu1 %vm108_vm1, %v1305_v58  ;;  %3672 = vmatpush3.msra.mxu0 %v1458_v15  ;;  %v3303_v15 = vld [vmem:[%s4934_s27 + $0x20] sm:$0xff] }
 0x9d1   :  { %3646 = vmatmul.mubr.msk.f32.vlgmr.msra.gmra.mxu1 %vm108_vm1, %v1306_v55  ;;  %3673 = vmatprep.subr.mxu0 %v1457_v17 }
 0x9d2   :  { %3674 = vmatpush3.msra.mxu0 %v1457_v17 }
 0x9d3   :  { %v3895_v57 = vpop.eup %3894  ;;  %3675 = vmatprep.subr.mxu0 %v1456_v19 }
 0x9d4   :  { %v1287_v59 = vmul.f32 %v3895_v57, %v1255_v22  ;;  %3676 = vmatpush3.msra.mxu0 %v1456_v19  ;;  %v3297_v22 = vld [vmem:[%s4911_s12] ss:$0 sm:$0xff] }
 0x9d5   :  { %3677 = vmatprep.subr.mxu0 %v1455_v41 }
 0x9d6   :  { %v1297_v33 = vmul.f32 %v3295_v50, %v1287_v59  ;;  %3678 = vmatpush3.msra.mxu0 %v1455_v41 }
 0x9d7   :  { %v3897_v62 = vpop.eup %3896  ;;  %3679 = vmatprep.subr.mxu0 %v1454_v21 }
 0x9d8   :  { %v1307_v30 = vadd.f32 %v3296_v54, %v1297_v33  ;;  %v1288_v63 = vmul.f32 %v3897_v62, %v1256_v28  ;;  %3680 = vmatpush3.msra.mxu0 %v1454_v21 }
 0x9d9   :  { %3681 = vmatprep.subr.mxu0 %v1453_v44 }
 0x9da   :  { %3648 = vmatprep.mubr.msk.f32.mxu1 %vm108_vm1, %v1307_v30  ;;  %v1298_v0 = vmul.f32 %v3295_v50, %v1288_v63  ;;  %3682 = vmatpush3.msra.mxu0 %v1453_v44 }
 0x9dc   :  { %v1308_v2 = vadd.f32 %v3296_v54, %v1298_v0 }
 0x9de   :  { %3649 = vmatmul.mubr.msk.f32.gmra.mxu1 %vm108_vm1, %v1308_v2 }
 0xa91   :  { %v3647_v25 = vpop.f32.mrf.mxu1 }
 0xa92   :  { %v1404_v26 = vadd.f32 %v3647_v25, %v3297_v22 }
 0xa93   :  { %v1398_v27 = vpop.f32.mrf.mxu1 }
 0xa94   :  { %v1418_v28 = vmul.f32 %v1404_v26, %v1404_v26  ;;  %v1399_v29 = vadd.f32 %v3297_v22, %v1398_v27 }
 0xa96   :  { %v1422_v31 = vmul.f32 %v1418_v28, %v1404_v26  ;;  %v1417_v32 = vmul.f32 %v1399_v29, %v1399_v29  ;;  %v3305_v28 = vld [vmem:[%s4934_s27 + $0x30] sm:$0xff] }
 0xa98   :  { %v1426_v34 = vmul.f32 0.044715, %v1422_v31  ;;  %v1421_v20 = vmul.f32 %v1417_v32, %v1399_v29 }
 0xa9a   :  { %v1430_v35 = vadd.f32 %v1426_v34, %v1404_v26  ;;  %v1425_v18 = vmul.f32 0.044715, %v1421_v20 }
 0xa9c   :  { %v1434_v23 = vmul.f32 0.7978846, %v1430_v35  ;;  %v1429_v24 = vadd.f32 %v1425_v18, %v1399_v29 }
 0xa9e   :  { %3898 = vtanh.f32 %v1434_v23  ;;  %v1433_v36 = vmul.f32 0.7978846, %v1429_v24  ;;  %v3650_v37 = vpop.f32.mrf.mxu1 }
 0xa9f   :  { %v1414_v38 = vadd.f32 %v3650_v37, %v3297_v22 }
 0xaa0   :  { %3900 = vtanh.f32 %v1433_v36  ;;  %v1408_v39 = vpop.f32.mrf.mxu1 }
 0xaa1   :  { %v1420_v40 = vmul.f32 %v1414_v38, %v1414_v38  ;;  %v1409_v42 = vadd.f32 %v3297_v22, %v1408_v39 }
 0xaa3   :  { %v1424_v43 = vmul.f32 %v1420_v40, %v1414_v38  ;;  %v1419_v45 = vmul.f32 %v1409_v42, %v1409_v42 }
 0xaa5   :  { %v1428_v46 = vmul.f32 0.044715, %v1424_v43  ;;  %v1423_v47 = vmul.f32 %v1419_v45, %v1409_v42 }
 0xaa7   :  { %v1432_v48 = vadd.f32 %v1428_v46, %v1414_v38  ;;  %v1427_v49 = vmul.f32 0.044715, %v1423_v47 }
 0xaa9   :  { %v1436_v50 = vmul.f32 0.7978846, %v1432_v48  ;;  %v1431_v51 = vadd.f32 %v1427_v49, %v1409_v42 }
 0xaab   :  { %v3899_v52 = vpop.eup %3898  ;;  %3902 = vtanh.f32 %v1436_v50  ;;  %v1435_v53 = vmul.f32 0.7978846, %v1431_v51  ;;  %v3314_v50 = vld [vmem:[%s4904_s5 + $0x38] sm:$0xff]  ;;  %v3313_v51 = vld [vmem:[%s4904_s5 + $0x30] sm:$0xff] }
 0xaac   :  { %v1442_v54 = vadd.f32 1.0, %v3899_v52  ;;  %3689 = vmatprep.subr.mxu1 %v3314_v50  ;;  %v3312_v52 = vld [vmem:[%s4904_s5 + $0x28] sm:$0xff] }
 0xaad   :  { %v3901_v56 = vpop.eup %3900  ;;  %3904 = vtanh.f32 %v1435_v53  ;;  %3690 = vmatpush3.msra.mxu1 %v3314_v50  ;;  %v3311_v53 = vld [vmem:[%s4904_s5 + $0x20] sm:$0xff] }
 0xaae   :  { %v1441_v58 = vadd.f32 1.0, %v3901_v56  ;;  %v1446_v55 = vmul.f32 0.5, %v1442_v54  ;;  %3691 = vmatprep.subr.mxu1 %v3313_v51 }
 0xaaf   :  { %3692 = vmatpush3.msra.mxu1 %v3313_v51  ;;  %v4641_v51 = vld [vmem:[%s4938_s30 + $0x10] sm:$0xff] }
 0xab0   :  { %v1445_v57 = vmul.f32 0.5, %v1441_v58  ;;  %v1450_v33 = vmul.f32 %v1446_v55, %v1404_v26  ;;  %3693 = vmatprep.subr.mxu1 %v3312_v52 }
 0xab1   :  { %3694 = vmatpush3.msra.mxu1 %v3312_v52 }
 0xab2   :  { %v1449_v59 = vmul.f32 %v1445_v57, %v1399_v29  ;;  %3695 = vmatprep.subr.mxu1 %v3311_v53 }
 0xab3   :  { %3696 = vmatpush3.msra.mxu1 %v3311_v53 }
 0xab4   :  { %3683 = vmatprep.mubr.f32.mxu0 %v1449_v59 }
 0xab5   :  { %3684 = vmatmul.mubr.f32.vlgmr.msra.gmra.mxu0 %v1450_v33 }
 0xab8   :  { %v3903_v62 = vpop.eup %3902 }
 0xab9   :  { %v1444_v30 = vadd.f32 1.0, %v3903_v62 }
 0xaba   :  { %v3905_v63 = vpop.eup %3904 }
 0xabb   :  { %v1443_v0 = vadd.f32 1.0, %v3905_v63  ;;  %v1448_v2 = vmul.f32 0.5, %v1444_v30 }
 0xabd   :  { %v1447_v3 = vmul.f32 0.5, %v1443_v0  ;;  %v1452_v6 = vmul.f32 %v1448_v2, %v1414_v38 }
 0xabf   :  { %v1451_v4 = vmul.f32 %v1447_v3, %v1409_v42 }
 0xac1   :  { %3686 = vmatprep.mubr.f32.mxu0 %v1451_v4 }
 0xac2   :  { %3687 = vmatmul.mubr.f32.gmra.mxu0 %v1452_v6  ;;  %v3309_v6 = vld [vmem:[%s4937_s24 + $0x1] ss:$0 sm:$0xff] }
 0xb75   :  { %v3685_v8 = vpop.f32.mrf.mxu0 }
 0xb76   :  { %v1548_v10 = vadd.f32 %v3685_v8, %v3302_v7 }
 0xb77   :  { %v1542_v12 = vpop.f32.mrf.mxu0 }
 0xb78   :  { %v1562_v14 = vadd.f32 %v1548_v10, %v4414_v61  ;;  %v1543_v11 = vadd.f32 %v3302_v7, %v1542_v12  ;;  %v3310_v12 = vld [vmem:[%s4903_s4 + $0x1] ss:$0 sm:$0xff] }
 0xb7a   :  { %1565 = vst.msk [vmem:[#allocation6] sm:$0xff] %vm108_vm1, %v1562_v14  ;;  %v1561_v17 = vadd.f32 %v1543_v11, %v4417_v60  ;;  %v4528_v19 = vsel %vm4180_vm4, %v3304_v13, %v1562_v14  ;;  %v3306_v60 = vld [vmem:[%s4934_s27 + $0x38] sm:$0xff] }
 0xb7b   :  { %v1583_v41 = vsel %vm108_vm1, %v4528_v19, 0.0 }
 0xb7c   :  { %1584 = vadd.xlane.f32.xlu1 %v1583_v41  ;;  %v4534_v61 = vsel %vm88_vm0, %v3303_v15, %v1561_v17 }
 0xb7d   :  { %v1580_v21 = vsel %vm108_vm1, %v4534_v61, 0.0 }
 0xb7e   :  { %1581 = vadd.xlane.f32.xlu0 %v1580_v21 }
 0xb82   :  { %v3688_v44 = vpop.f32.mrf.mxu0 }
 0xb83   :  { %v1558_v22 = vadd.f32 %v3688_v44, %v3302_v7 }
 0xb84   :  { %v1552_v25 = vpop.f32.mrf.mxu0 }
 0xb85   :  { %v1564_v26 = vadd.f32 %v1558_v22, %v4427_v16  ;;  %v1553_v27 = vadd.f32 %v3302_v7, %v1552_v25 }
 0xb87   :  { %1566 = vst.msk [vmem:[#allocation6 + $0x8] sm:$0xff] %vm108_vm1, %v1564_v26  ;;  %v1563_v29 = vadd.f32 %v1553_v27, %v4424_v5  ;;  %v4549_v31 = vsel %vm4180_vm4, %v3306_v60, %v1564_v26  ;;  %v3316_v26 = vld [vmem:[%s4905_s6 + $0x1] ss:$0 sm:$0xff] }
 0xb88   :  { %v1589_v32 = vsel %vm108_vm1, %v4549_v31, 0.0 }
 0xb89   :  { %1590 = vadd.xlane.f32.xlu1 %v1589_v32  ;;  %v4555_v16 = vsel %vm88_vm0, %v3305_v28, %v1563_v29 }
 0xb8a   :  { %v1586_v34 = vsel %vm108_vm1, %v4555_v16, 0.0 }
 0xb8b   :  { %1587 = vadd.xlane.f32.xlu0 %v1586_v34 }
 0xc05   :  { %v1585_v20 = vpop.xlane.xlu1 %1584 }
 0xc06   :  { %v1593_v35 = vmul.f32 0.03125, %v1585_v20 }
 0xc07   :  { %v1582_v18 = vpop.xlane.xlu0 %1581 }
 0xc08   :  { %v1597_v5 = vsub.f32 %v4528_v19, %v1593_v35  ;;  %v1592_v9 = vmul.f32 0.03125, %v1582_v18 }
 0xc0a   :  { %v1596_v23 = vsub.f32 %v4534_v61, %v1592_v9  ;;  %v1601_v24 = vmul.f32 %v1597_v5, %v1597_v5 }
 0xc0c   :  { %v1607_v36 = vsel %vm108_vm1, %v1601_v24, 0.0  ;;  %v1600_v37 = vmul.f32 %v1596_v23, %v1596_v23 }
 0xc0d   :  { %1608 = vadd.xlane.f32.xlu1 %v1607_v36 }
 0xc0e   :  { %v1604_v1 = vsel %vm108_vm1, %v1600_v37, 0.0 }
 0xc0f   :  { %1605 = vadd.xlane.f32.xlu0 %v1604_v1 }
 0xc12   :  { %v1591_v38 = vpop.xlane.xlu1 %1590 }
 0xc13   :  { %v1595_v39 = vmul.f32 0.03125, %v1591_v38 }
 0xc14   :  { %v1588_v40 = vpop.xlane.xlu0 %1587 }
 0xc15   :  { %v1599_v42 = vsub.f32 %v4549_v31, %v1595_v39  ;;  %v1594_v43 = vmul.f32 0.03125, %v1588_v40  ;;  %v4627_v39 = vld [vmem:[%s4938_s30 + $0x8] sm:$0xff] }
 0xc17   :  { %v1598_v45 = vsub.f32 %v4555_v16, %v1594_v43  ;;  %v1603_v46 = vmul.f32 %v1599_v42, %v1599_v42  ;;  %v4634_v43 = vld [vmem:[%s4938_s30] sm:$0xff] }
 0xc19   :  { %v1613_v47 = vsel %vm108_vm1, %v1603_v46, 0.0  ;;  %v1602_v48 = vmul.f32 %v1598_v45, %v1598_v45 }
 0xc1a   :  { %1614 = vadd.xlane.f32.xlu1 %v1613_v47 }
 0xc1b   :  { %v1610_v49 = vsel %vm108_vm1, %v1602_v48, 0.0 }
 0xc1c   :  { %1611 = vadd.xlane.f32.xlu0 %v1610_v49 }
 0xc96   :  { %v1609_v54 = vpop.xlane.xlu1 %1608 }
 0xc97   :  { %v1617_v56 = vmul.f32 0.03125, %v1609_v54  ;;  %v4648_v54 = vld [vmem:[%s4938_s30 + $0x18] sm:$0xff] }
 0xc98   :  { %v1606_v58 = vpop.xlane.xlu0 %1605 }
 0xc99   :  { %v1621_v55 = vadd.f32 1e-05, %v1617_v56  ;;  %v1616_v57 = vmul.f32 0.03125, %v1606_v58 }
 0xc9b   :  { %3906 = vrsqrt.f32 %v1621_v55  ;;  %v1620_v59 = vadd.f32 1e-05, %v1616_v57 }
 0xc9d   :  { %3908 = vrsqrt.f32 %v1620_v59 }
 0xca3   :  { %v1615_v33 = vpop.xlane.xlu1 %1614 }
 0xca4   :  { %v1619_v62 = vmul.f32 0.03125, %v1615_v33 }
 0xca5   :  { %v1612_v30 = vpop.xlane.xlu0 %1611 }
 0xca6   :  { %v1623_v63 = vadd.f32 1e-05, %v1619_v62  ;;  %v1618_v0 = vmul.f32 0.03125, %v1612_v30 }
 0xca8   :  { %v3907_v2 = vpop.eup %3906  ;;  %3910 = vrsqrt.f32 %v1623_v63  ;;  %v1622_v3 = vadd.f32 1e-05, %v1618_v0 }
 0xca9   :  { %v1629_v4 = vmul.f32 %v3907_v2, %v1597_v5 }
 0xcaa   :  { %v3909_v7 = vpop.eup %3908  ;;  %3912 = vrsqrt.f32 %v1622_v3 }
 0xcab   :  { %v1628_v8 = vmul.f32 %v3909_v7, %v1596_v23  ;;  %v1639_v10 = vmul.f32 %v3309_v6, %v1629_v4 }
 0xcad   :  { %v1638_v13 = vmul.f32 %v3309_v6, %v1628_v8  ;;  %v1649_v11 = vadd.f32 %v3310_v12, %v1639_v10 }
 0xcaf   :  { %v1648_v14 = vadd.f32 %v3310_v12, %v1638_v13 }
 0xcb1   :  { %3697 = vmatprep.mubr.msk.f32.mxu1 %vm108_vm1, %v1648_v14 }
 0xcb2   :  { %3698 = vmatmul.mubr.msk.f32.vlgmr.msra.gmra.mxu1 %vm108_vm1, %v1649_v11 }
 0xcb5   :  { %v3911_v15 = vpop.eup %3910 }
 0xcb6   :  { %v1631_v17 = vmul.f32 %v3911_v15, %v1599_v42 }
 0xcb7   :  { %v3913_v41 = vpop.eup %3912 }
 0xcb8   :  { %v1630_v21 = vmul.f32 %v3913_v41, %v1598_v45  ;;  %v1641_v44 = vmul.f32 %v3309_v6, %v1631_v17 }
 0xcba   :  { %v1640_v22 = vmul.f32 %v3309_v6, %v1630_v21  ;;  %v1651_v60 = vadd.f32 %v3310_v12, %v1641_v44 }
 0xcbc   :  { %v1650_v25 = vadd.f32 %v3310_v12, %v1640_v22 }
 0xcbe   :  { %3700 = vmatprep.mubr.msk.f32.mxu1 %vm108_vm1, %v1650_v25 }
 0xcbf   :  { %3701 = vmatmul.mubr.msk.f32.gmra.mxu1 %vm108_vm1, %v1651_v60 }
 0xd72   :  { %v3699_v27 = vpop.f32.mrf.mxu1 }
 0xd73   :  { %v4592_v28 = vadd.f32 %v3699_v27, %v3316_v26 }
 0xd74   :  { %v1743_v29 = vpop.f32.mrf.mxu1 }
 0xd75   :  { %v4594_v32 = vadd.f32 %v3316_v26, %v1743_v29  ;;  %1766 = vrot.lane.b32.xlu0 %v4592_v28, %s4043_s28 }
 0xd77   :  { %1764 = vrot.lane.b32.xlu1 %v4594_v32, %s4043_s28  ;;  %3707 = vmatprep.mubr.msk.f32.mxu1 %vm296_vm5, %v4594_v32 }
 0xd7f   :  { %v3702_v34 = vpop.f32.mrf.mxu1 }
 0xd80   :  { %v4602_v20 = vadd.f32 %v3702_v34, %v3316_v26 }
 0xd81   :  { %v1753_v35 = vpop.f32.mrf.mxu1 }
 0xd82   :  { %1855 = vrot.lane.b32.xlu1 %v4602_v20, %s4043_s28  ;;  %v4606_v18 = vadd.f32 %v3316_v26, %v1753_v35 }
 0xd86   :  { %1853 = vrot.lane.b32.xlu1 %v4606_v18, %s4043_s28 }
 0xde7   :  { %v1767_v5 = vpop.permute.xlu0 %1766 }
 0xde8   :  { %3703 = vmatprep.subr.msk.mxu1 %vm296_vm5, %v1767_v5 }
 0xde9   :  { %v1765_v9 = vpop.permute.xlu1 %1764  ;;  %3704 = vmatpush3.xpose.msk.msra.mxu1 %vm296_vm5, %v1767_v5 }
 0xdea   :  { %3705 = vmatprep.subr.msk.mxu1 %vm296_vm5, %v1765_v9 }
 0xded   :  { %3706 = vmatpush3.xpose.msk.msra.mxu1 %vm296_vm5, %v1765_v9 }
 0xdf0   :  { %3708 = vmatmul.mubr.msk.f32.vlgmr.msra.gmra.mxu1 %vm296_vm5, %v4592_v28 }
 0xdf1   :  { %3714 = vmatprep.mubr.msk.f32.mxu1 %vm296_vm5, %v4606_v18 }
 0xdf4   :  { %v1856_v23 = vpop.permute.xlu1 %1855 }
 0xdf5   :  { %3710 = vmatprep.subr.msk.mxu1 %vm296_vm5, %v1856_v23 }
 0xdf6   :  { %3711 = vmatpush3.xpose.msk.msra.mxu1 %vm296_vm5, %v1856_v23 }
 0xdf8   :  { %v1854_v24 = vpop.permute.xlu1 %1853 }
 0xdf9   :  { %3712 = vmatprep.subr.msk.mxu1 %vm296_vm5, %v1854_v24 }
 0xdfa   :  { %3713 = vmatpush3.xpose.msk.msra.mxu1 %vm296_vm5, %v1854_v24 }
 0xdfd   :  { %3715 = vmatmul.mubr.msk.f32.vlgmr.msra.gmra.mxu1 %vm296_vm5, %v4602_v20 }
 0xeb0   :  { %v3709_v36 = vpop.f32.mrf.mxu1 }
 0xeb1   :  { %v1941_v37 = vmul.f32 0.25, %v3709_v36 }
 0xeb2   :  { %v1842_v1 = vpop.f32.mrf.mxu1 }
 0xeb3   :  { %v1940_v38 = vmul.f32 0.25, %v1842_v1  ;;  %v1945_v40 = vadd.f32 %v4627_v39, %v1941_v37 }
 0xeb5   :  { %v1951_v42 = vsel %vm296_vm5, %v1945_v40, -inf  ;;  %v1944_v45 = vadd.f32 %v4634_v43, %v1940_v38 }
 0xeb6   :  { %1952 = vmax.xlane.f32.xlu1 %v1951_v42 }
 0xeb7   :  { %v1948_v46 = vsel %vm296_vm5, %v1944_v45, -inf }
 0xeb8   :  { %1949 = vmax.xlane.f32.xlu0 %v1948_v46 }
 0xebd   :  { %v3716_v47 = vpop.f32.mrf.mxu1 }
 0xebe   :  { %v1943_v49 = vmul.f32 0.25, %v3716_v47 }
 0xebf   :  { %v1931_v48 = vpop.f32.mrf.mxu1 }
 0xec0   :  { %v1942_v50 = vmul.f32 0.25, %v1931_v48  ;;  %v1947_v56 = vadd.f32 %v4648_v54, %v1943_v49 }
 0xec2   :  { %v1946_v52 = vadd.f32 %v4641_v51, %v1942_v50  ;;  %v1957_v58 = vsel %vm296_vm5, %v1947_v56, -inf }
 0xec4   :  { %v1954_v53 = vsel %vm296_vm5, %v1946_v52, -inf }
 0xec5   :  { %1955 = vmax.xlane.f32.xlu0 %v1954_v53 }
 0xec9   :  { %1958 = vmax.xlane.f32.xlu0 %v1957_v58 }
 0xf3f   :  { %v1953_v55 = vpop.xlane.xlu1 %1952 }
 0xf40   :  { %v1961_v57 = vsub.f32 %v1945_v40, %v1953_v55 }
 0xf41   :  { %v1950_v59 = vpop.xlane.xlu0 %1949 }
 0xf42   :  { %v1966_v33 = vmul.f32 1.442695, %v1961_v57  ;;  %v1960_v62 = vsub.f32 %v1944_v45, %v1950_v59 }
 0xf44   :  { %3914 = vpow2.f32 %v1966_v33  ;;  %v1964_v30 = vmul.f32 1.442695, %v1960_v62 }
 0xf46   :  { %3916 = vpow2.f32 %v1964_v30 }
 0xf4e   :  { %v1956_v4 = vpop.xlane.xlu0 %1955 }
 0xf4f   :  { %v1962_v6 = vsub.f32 %v1946_v52, %v1956_v4 }
 0xf51   :  { %v3915_v63 = vpop.eup %3914  ;;  %v1968_v8 = vmul.f32 1.442695, %v1962_v6 }
 0xf52   :  { %v1975_v0 = vsel %vm296_vm5, %v3915_v63, 0.0  ;;  %v1959_v7 = vpop.xlane.xlu0 %1958 }
 0xf53   :  { %v3917_v2 = vpop.eup %3916  ;;  %1976 = vadd.xlane.f32.xlu1 %v1975_v0  ;;  %v1963_v10 = vsub.f32 %v1947_v56, %v1959_v7  ;;  %3918 = vpow2.f32 %v1968_v8 }
 0xf54   :  { %v1972_v3 = vsel %vm296_vm5, %v3917_v2, 0.0 }
 0xf55   :  { %1973 = vadd.xlane.f32.xlu0 %v1972_v3  ;;  %v1970_v12 = vmul.f32 1.442695, %v1963_v10 }
 0xf57   :  { %3920 = vpow2.f32 %v1970_v12 }
 0xf60   :  { %v3919_v13 = vpop.eup %3918 }
 0xf61   :  { %v1978_v14 = vsel %vm296_vm5, %v3919_v13, 0.0 }
 0xf64   :  { %1992 = vrot.lane.b32.xlu1 %v4594_v32, %s4045_s17  ;;  %v3921_v11 = vpop.eup %3920 }
 0xf65   :  { %v1981_v15 = vsel %vm296_vm5, %v3921_v11, 0.0 }
 0xf68   :  { %2081 = vrot.lane.b32.xlu1 %v4602_v20, %s4045_s17 }
 0xf6b   :  { %1994 = vrot.lane.b32.xlu0 %v4592_v28, %s4045_s17 }
 0xf6c   :  { %2172 = vrot.lane.b32.xlu1 %v4592_v28, %s4044_s25 }
 0xf6f   :  { %2079 = vrot.lane.b32.xlu0 %v4606_v18, %s4045_s17 }
 0xf70   :  { %2170 = vrot.lane.b32.xlu1 %v4594_v32, %s4044_s25 }
 0xf73   :  { %2263 = vrot.lane.b32.xlu0 %v4602_v20, %s4044_s25 }
 0xf74   :  { %2166 = vrot.lane.b32.xlu1 %v4594_v32, %s4046_s29 }
 0xf92   :  { %1979 = vadd.xlane.f32.xlu0 %v1978_v14 }
 0xf98   :  { %1982 = vadd.xlane.f32.xlu1 %v1981_v15 }
 0xfa8   :  { %2168 = vrot.lane.b32.xlu0 %v4592_v28, %s4046_s29 }
 0xfa9   :  { %2261 = vrot.lane.b32.xlu1 %v4606_v18, %s4044_s25 }
 0xfac   :  { %2257 = vrot.lane.b32.xlu0 %v4606_v18, %s4046_s29 }
 0xfad   :  { %2259 = vrot.lane.b32.xlu1 %v4602_v20, %s4046_s29 }
 0xfdc   :  { %v1977_v17 = vpop.xlane.xlu1 %1976 }
 0xfdd   :  { %3922 = vrcp.f32 %v1977_v17 }
 0xfde   :  { %v1974_v41 = vpop.xlane.xlu0 %1973 }
 0xfdf   :  { %3924 = vrcp.f32 %v1974_v41 }
 0xfe0   :  { %v1993_v21 = vpop.permute.xlu1 %1992 }
 0xfe2   :  { %v1995_v44 = vpop.permute.xlu0 %1994 }
 0xfe3   :  { %3717 = vmatprep.subr.mxu1 %v1995_v44 }
 0xfe4   :  { %v2082_v22 = vpop.permute.xlu1 %2081  ;;  %3718 = vmatpush3.msra.mxu1 %v1995_v44 }
 0xfe5   :  { %3719 = vmatprep.subr.mxu1 %v1993_v21 }
 0xfe6   :  { %3720 = vmatpush3.msra.mxu1 %v1993_v21  ;;  %v2080_v29 = vpop.permute.xlu0 %2079 }
 0xfe7   :  { %3724 = vmatprep.subr.mxu1 %v2082_v22 }
 0xfe8   :  { %v2173_v25 = vpop.permute.xlu1 %2172 }
 0xfe9   :  { %3731 = vmatprep.subr.msk.mxu0 %vm296_vm5, %v2173_v25 }
 0xfea   :  { %3732 = vmatpush3.xpose.msk.msra.mxu0 %vm296_vm5, %v2173_v25  ;;  %v3923_v60 = vpop.eup %3922  ;;  %v2264_v9 = vpop.permute.xlu0 %2263 }
 0xfeb   :  { %v1989_v35 = vmul.f32 %v3923_v60, %v3915_v63 }
 0xfec   :  { %v3925_v26 = vpop.eup %3924  ;;  %v2171_v27 = vpop.permute.xlu1 %2170 }
 0xfed   :  { %3733 = vmatprep.subr.msk.mxu0 %vm296_vm5, %v2171_v27  ;;  %v1988_v34 = vmul.f32 %v3925_v26, %v3917_v2 }
 0xfee   :  { %3734 = vmatpush3.xpose.msk.msra.mxu0 %vm296_vm5, %v2171_v27 }
 0xfef   :  { %3721 = vmatprep.mubr.msk.f32.mxu1 %vm296_vm5, %v1988_v34 }
 0xff0   :  { %v2167_v5 = vpop.permute.xlu1 %2166  ;;  %3722 = vmatmul.mubr.msk.f32.vlgmr.msra.gmra.mxu1 %vm296_vm5, %v1989_v35 }
 0xff1   :  { %3725 = vmatpush3.msra.mxu1 %v2082_v22  ;;  %3735 = vmatprep.mubr.msk.f32.mxu0 %vm296_vm5, %v2167_v5 }
 0xff2   :  { %3726 = vmatprep.subr.mxu1 %v2080_v29 }
 0xff3   :  { %3727 = vmatpush3.msra.mxu1 %v2080_v29 }
 0xff4   :  { %3738 = vmatprep.subr.msk.mxu1 %vm296_vm5, %v2264_v9 }
0x101b   :  { %v1980_v23 = vpop.xlane.xlu0 %1979 }
0x101c   :  { %3926 = vrcp.f32 %v1980_v23 }
0x101f   :  { %v2169_v24 = vpop.permute.xlu0 %2168 }
0x1020   :  { %3736 = vmatmul.mubr.msk.f32.vlgmr.msra.gmra.mxu0 %vm296_vm5, %v2169_v24 }
0x1021   :  { %v1983_v36 = vpop.xlane.xlu1 %1982 }
0x1022   :  { %3928 = vrcp.f32 %v1983_v36 }
0x1023   :  { %v2258_v42 = vpop.permute.xlu0 %2257 }
0x1025   :  { %v2262_v45 = vpop.permute.xlu1 %2261 }
0x1029   :  { %v3927_v37 = vpop.eup %3926  ;;  %v2260_v46 = vpop.permute.xlu1 %2259 }
0x102a   :  { %v1990_v1 = vmul.f32 %v3927_v37, %v3919_v13 }
0x102c   :  { %3728 = vmatprep.mubr.msk.f32.mxu1 %vm296_vm5, %v1990_v1 }
0x102f   :  { %v3929_v38 = vpop.eup %3928 }
0x1030   :  { %v1991_v40 = vmul.f32 %v3929_v38, %v3921_v11 }
0x1032   :  { %3729 = vmatmul.mubr.msk.f32.vlgmr.msra.gmra.mxu1 %vm296_vm5, %v1991_v40  ;;  %v3348_v40 = vld [vmem:[%s4906_s7 + $0x38] sm:$0xff] }
0x1033   :  { %3739 = vmatpush3.xpose.msk.msra.mxu1 %vm296_vm5, %v2264_v9  ;;  %3742 = vmatprep.mubr.msk.f32.mxu1 %vm296_vm5, %v2258_v42  ;;  %v3347_v42 = vld [vmem:[%s4906_s7 + $0x30] sm:$0xff] }
0x1034   :  { %3740 = vmatprep.subr.msk.mxu1 %vm296_vm5, %v2262_v45 }
0x1037   :  { %3741 = vmatpush3.xpose.msk.msra.mxu1 %vm296_vm5, %v2262_v45  ;;  %v3346_v45 = vld [vmem:[%s4906_s7 + $0x28] sm:$0xff] }
0x103a   :  { %3743 = vmatmul.mubr.msk.f32.vlgmr.msra.gmra.mxu1 %vm296_vm5, %v2260_v46  ;;  %v3345_v46 = vld [vmem:[%s4906_s7 + $0x20] sm:$0xff] }
0x10b0   :  { %v4700_v55 = vpop.f32.mrf.mxu1 }
0x10b2   :  { %v4702_v57 = vpop.f32.mrf.mxu1 }
0x10e0   :  { %v3737_v47 = vpop.f32.mrf.mxu0 }
0x10e1   :  { %v2349_v48 = vmul.f32 0.25, %v3737_v47 }
0x10e2   :  { %v2248_v49 = vpop.f32.mrf.mxu0 }
0x10e3   :  { %v2348_v50 = vmul.f32 0.25, %v2248_v49  ;;  %v2353_v52 = vadd.f32 %v4627_v39, %v2349_v48 }
0x10e5   :  { %v2359_v53 = vsel %vm296_vm5, %v2353_v52, -inf  ;;  %v2352_v56 = vadd.f32 %v4634_v43, %v2348_v50 }
0x10e6   :  { %2360 = vmax.xlane.f32.xlu1 %v2359_v53 }
0x10e7   :  { %v2356_v58 = vsel %vm296_vm5, %v2352_v56, -inf }
0x10e8   :  { %2357 = vmax.xlane.f32.xlu0 %v2356_v58 }
0x10f2   :  { %v4704_v59 = vpop.f32.mrf.mxu1 }
0x10f4   :  { %v4706_v33 = vpop.f32.mrf.mxu1 }
0x10fa   :  { %v3744_v62 = vpop.f32.mrf.mxu1 }
0x10fb   :  { %v2351_v63 = vmul.f32 0.25, %v3744_v62 }
0x10fc   :  { %v2339_v30 = vpop.f32.mrf.mxu1 }
0x10fd   :  { %v2350_v39 = vmul.f32 0.25, %v2339_v30  ;;  %v2355_v2 = vadd.f32 %v4648_v54, %v2351_v63 }
0x10ff   :  { %v2354_v0 = vadd.f32 %v4641_v51, %v2350_v39  ;;  %v2365_v3 = vsel %vm296_vm5, %v2355_v2, -inf }
0x1101   :  { %v2362_v43 = vsel %vm296_vm5, %v2354_v0, -inf }
0x1102   :  { %2363 = vmax.xlane.f32.xlu0 %v2362_v43 }
0x1106   :  { %2366 = vmax.xlane.f32.xlu0 %v2365_v3 }
0x116f   :  { %v2361_v4 = vpop.xlane.xlu1 %2360 }
0x1170   :  { %v2369_v6 = vsub.f32 %v2353_v52, %v2361_v4 }
0x1171   :  { %v2358_v7 = vpop.xlane.xlu0 %2357 }
0x1172   :  { %v2374_v8 = vmul.f32 1.442695, %v2369_v6  ;;  %v2368_v10 = vsub.f32 %v2352_v56, %v2358_v7 }
0x1174   :  { %3930 = vpow2.f32 %v2374_v8  ;;  %v2372_v12 = vmul.f32 1.442695, %v2368_v10 }
0x1176   :  { %3932 = vpow2.f32 %v2372_v12 }
0x1181   :  { %v3931_v13 = vpop.eup %3930 }
0x1182   :  { %v2383_v14 = vsel %vm296_vm5, %v3931_v13, 0.0 }
0x1183   :  { %v3933_v51 = vpop.eup %3932  ;;  %2384 = vadd.xlane.f32.xlu1 %v2383_v14 }
0x1184   :  { %v2380_v11 = vsel %vm296_vm5, %v3933_v51, 0.0 }
0x1185   :  { %2381 = vadd.xlane.f32.xlu0 %v2380_v11 }
0x118b   :  { %v2364_v54 = vpop.xlane.xlu0 %2363 }
0x118c   :  { %v2370_v15 = vsub.f32 %v2354_v0, %v2364_v54 }
0x118e   :  { %v2376_v17 = vmul.f32 1.442695, %v2370_v15 }
0x118f   :  { %v2367_v41 = vpop.xlane.xlu0 %2366 }
0x1190   :  { %3934 = vpow2.f32 %v2376_v17  ;;  %v2371_v21 = vsub.f32 %v2355_v2, %v2367_v41 }
0x1192   :  { %v2378_v44 = vmul.f32 1.442695, %v2371_v21 }
0x1194   :  { %3936 = vpow2.f32 %v2378_v44 }
0x119d   :  { %v3935_v22 = vpop.eup %3934 }
0x119e   :  { %v2386_v25 = vsel %vm296_vm5, %v3935_v22, 0.0 }
0x119f   :  { %2387 = vadd.xlane.f32.xlu0 %v2386_v25 }
0x11a1   :  { %v3937_v60 = vpop.eup %3936 }
0x11a2   :  { %v2389_v26 = vsel %vm296_vm5, %v3937_v60, 0.0 }
0x11a3   :  { %2390 = vadd.xlane.f32.xlu1 %v2389_v26 }
0x11b4   :  { %2400 = vrot.lane.b32.xlu1 %v4594_v32, %s4047_s0 }
0x11b5   :  { %2402 = vrot.lane.b32.xlu0 %v4592_v28, %s4047_s0 }
0x11b8   :  { %2489 = vrot.lane.b32.xlu1 %v4602_v20, %s4047_s0 }
0x11bc   :  { %2487 = vrot.lane.b32.xlu1 %v4606_v18, %s4047_s0 }
0x120c   :  { %v2385_v35 = vpop.xlane.xlu1 %2384 }
0x120e   :  { %v2382_v27 = vpop.xlane.xlu0 %2381 }
0x120f   :  { %3938 = vrcp.f32 %v2382_v27 }
0x1210   :  { %3940 = vrcp.f32 %v2385_v35 }
0x121c   :  { %v3939_v29 = vpop.eup %3938 }
0x121d   :  { %v2396_v34 = vmul.f32 %v3939_v29, %v3933_v51  ;;  %v3941_v28 = vpop.eup %3940 }
0x121e   :  { %v2397_v23 = vmul.f32 %v3941_v28, %v3931_v13  ;;  %v3360_v28 = vld [vmem:[%s4910_s11 + $0x28] sm:$0xff] }
0x121f   :  { %3749 = vmatprep.mubr.msk.f32.mxu0 %vm296_vm5, %v2396_v34 }
0x1228   :  { %v2388_v5 = vpop.xlane.xlu0 %2387 }
0x1229   :  { %3942 = vrcp.f32 %v2388_v5 }
0x122c   :  { %v2391_v32 = vpop.xlane.xlu1 %2390  ;;  %v2403_v9 = vpop.permute.xlu0 %2402 }
0x122d   :  { %3944 = vrcp.f32 %v2391_v32  ;;  %3745 = vmatprep.subr.mxu0 %v2403_v9  ;;  %v3362_v32 = vld [vmem:[%s4910_s11 + $0x38] sm:$0xff] }
0x122e   :  { %3746 = vmatpush3.msra.mxu0 %v2403_v9  ;;  %v3361_v9 = vld [vmem:[%s4910_s11 + $0x30] sm:$0xff] }
0x1230   :  { %v2401_v20 = vpop.permute.xlu1 %2400 }
0x1231   :  { %3747 = vmatprep.subr.mxu0 %v2401_v20 }
0x1232   :  { %3748 = vmatpush3.msra.mxu0 %v2401_v20  ;;  %v3359_v20 = vld [vmem:[%s4910_s11 + $0x20] sm:$0xff] }
0x1233   :  { %3750 = vmatmul.mubr.msk.f32.vlgmr.msra.gmra.mxu0 %vm296_vm5, %v2397_v23  ;;  %3759 = vmatprep.subr.mxu0 %v3348_v40 }
0x1234   :  { %v2490_v18 = vpop.permute.xlu1 %2489  ;;  %3760 = vmatpush3.msra.mxu0 %v3348_v40 }
0x1235   :  { %3752 = vmatprep.subr.mxu1 %v2490_v18  ;;  %3761 = vmatprep.subr.mxu0 %v3347_v42 }
0x1236   :  { %v3943_v24 = vpop.eup %3942  ;;  %3753 = vmatpush3.msra.mxu1 %v2490_v18  ;;  %3762 = vmatpush3.msra.mxu0 %v3347_v42 }
0x1237   :  { %v2398_v36 = vmul.f32 %v3943_v24, %v3935_v22  ;;  %3763 = vmatprep.subr.mxu0 %v3346_v45 }
0x1238   :  { %v2488_v37 = vpop.permute.xlu1 %2487  ;;  %3764 = vmatpush3.msra.mxu0 %v3346_v45 }
0x1239   :  { %3754 = vmatprep.subr.mxu1 %v2488_v37  ;;  %3756 = vmatprep.mubr.msk.f32.mxu1 %vm296_vm5, %v2398_v36 }
0x123a   :  { %v3945_v1 = vpop.eup %3944  ;;  %3755 = vmatpush3.msra.mxu1 %v2488_v37  ;;  %3765 = vmatprep.subr.mxu0 %v3345_v46 }
0x123b   :  { %v2399_v38 = vmul.f32 %v3945_v1, %v3937_v60  ;;  %3766 = vmatpush3.msra.mxu0 %v3345_v46  ;;  %3773 = vmatprep.subr.mxu1 %v3362_v32 }
0x123d   :  { %3757 = vmatmul.mubr.msk.f32.vlgmr.msra.gmra.mxu1 %vm296_vm5, %v2399_v38 }
0x123e   :  { %3774 = vmatpush3.msra.mxu1 %v3362_v32 }
0x123f   :  { %3775 = vmatprep.subr.mxu1 %v3361_v9 }
0x1240   :  { %3776 = vmatpush3.msra.mxu1 %v3361_v9 }
0x1241   :  { %3777 = vmatprep.subr.mxu1 %v3360_v28 }
0x1242   :  { %3778 = vmatpush3.msra.mxu1 %v3360_v28 }
0x1243   :  { %3779 = vmatprep.subr.mxu1 %v3359_v20 }
0x1244   :  { %3780 = vmatpush3.msra.mxu1 %v3359_v20 }
0x12f3   :  { %v3751_v47 = vpop.f32.mrf.mxu0 }
0x12f4   :  { %2580 = vrot.lane.b32.xlu1 %v3751_v47, %s4939_s20 }
0x12f5   :  { %v2478_v48 = vpop.f32.mrf.mxu0 }
0x12f6   :  { %2578 = vrot.lane.b32.xlu0 %v2478_v48, %s4939_s20 }
0x12fd   :  { %v3758_v49 = vpop.f32.mrf.mxu1 }
0x12fe   :  { %2584 = vrot.lane.b32.xlu1 %v3758_v49, %s4939_s20 }
0x12ff   :  { %v2565_v50 = vpop.f32.mrf.mxu1 }
0x1300   :  { %2582 = vrot.lane.b32.xlu0 %v2565_v50, %s4939_s20  ;;  %v3357_v50 = vld [vmem:[%s4908_s9 + $0x1] ss:$0 sm:$0xff] }
0x1366   :  { %v2581_v52 = vpop.permute.xlu1 %2580 }
0x1367   :  { %v2591_v58 = vsel %vm296_vm5, %v4700_v55, %v2581_v52  ;;  %v3350_v55 = vld [vmem:[%s4907_s8 + $0x1] ss:$0 sm:$0xff] }
0x1368   :  { %v2579_v53 = vpop.permute.xlu0 %2578 }
0x1369   :  { %v2590_v56 = vsel %vm296_vm5, %v4702_v57, %v2579_v53 }
0x136a   :  { %3767 = vmatprep.mubr.msk.f32.mxu0 %vm108_vm1, %v2590_v56 }
0x136b   :  { %3768 = vmatmul.mubr.msk.f32.vlgmr.msra.gmra.mxu0 %vm108_vm1, %v2591_v58  ;;  %v3358_v58 = vld [vmem:[%s4909_s10 + $0x1] ss:$0 sm:$0xff] }
0x1370   :  { %v2585_v62 = vpop.permute.xlu1 %2584 }
0x1371   :  { %v2593_v39 = vsel %vm296_vm5, %v4704_v59, %v2585_v62 }
0x1372   :  { %v2583_v30 = vpop.permute.xlu0 %2582 }
0x1373   :  { %v2592_v63 = vsel %vm296_vm5, %v4706_v33, %v2583_v30 }
0x1374   :  { %3770 = vmatprep.mubr.msk.f32.mxu0 %vm108_vm1, %v2592_v63 }
0x1375   :  { %3771 = vmatmul.mubr.msk.f32.gmra.mxu0 %vm108_vm1, %v2593_v39 }
0x142b   :  { %v3769_v57 = vpop.f32.mrf.mxu0 }
0x142c   :  { %v2691_v0 = vadd.f32 %v3769_v57, %v3350_v55 }
0x142d   :  { %v2685_v43 = vpop.f32.mrf.mxu0 }
0x142e   :  { %v4760_v2 = vadd.f32 %v2691_v0, %v4528_v19  ;;  %v2686_v3 = vadd.f32 %v3350_v55, %v2685_v43 }
0x1430   :  { %v4763_v33 = vadd.f32 %v2686_v3, %v4534_v61  ;;  %v2715_v59 = vsel %vm108_vm1, %v4760_v2, 0.0 }
0x1431   :  { %2716 = vadd.xlane.f32.xlu1 %v2715_v59 }
0x1432   :  { %v2712_v4 = vsel %vm108_vm1, %v4763_v33, 0.0 }
0x1433   :  { %2713 = vadd.xlane.f32.xlu0 %v2712_v4 }
0x1435   :  { %v3772_v6 = vpop.f32.mrf.mxu0 }
0x1436   :  { %v2701_v8 = vadd.f32 %v3772_v6, %v3350_v55  ;;  %v3384_v6 = vld [vmem:[%s4912_s13 + $0xf8] sm:$0xff] }
0x1437   :  { %v2695_v7 = vpop.f32.mrf.mxu0  ;;  %3787 = vmatprep.subr.mxu0 %v3384_v6 }
0x1438   :  { %v2696_v10 = vadd.f32 %v3350_v55, %v2695_v7  ;;  %v4773_v19 = vadd.f32 %v2701_v8, %v4549_v31  ;;  %3788 = vmatpush3.msra.mxu0 %v3384_v6  ;;  %v3383_v7 = vld [vmem:[%s4912_s13 + $0xf0] sm:$0xff]  ;;  %v3382_v8 = vld [vmem:[%s4912_s13 + $0xe8] sm:$0xff] }
0x1439   :  { %3789 = vmatprep.subr.mxu0 %v3383_v7 }
0x143a   :  { %v4770_v12 = vadd.f32 %v2696_v10, %v4555_v16  ;;  %v2721_v13 = vsel %vm108_vm1, %v4773_v19, 0.0  ;;  %3790 = vmatpush3.msra.mxu0 %v3383_v7  ;;  %v3381_v10 = vld [vmem:[%s4912_s13 + $0xe0] sm:$0xff] }
0x143b   :  { %3791 = vmatprep.subr.mxu0 %v3382_v8  ;;  %v3386_v7 = vld [vmem:[%s4913_s14 + $0x1] ss:$0 sm:$0xff] }
0x143c   :  { %v2718_v61 = vsel %vm108_vm1, %v4770_v12, 0.0  ;;  %3792 = vmatpush3.msra.mxu0 %v3382_v8 }
0x143d   :  { %2719 = vadd.xlane.f32.xlu0 %v2718_v61  ;;  %3793 = vmatprep.subr.mxu0 %v3381_v10  ;;  %v3380_v61 = vld [vmem:[%s4912_s13 + $0xd8] sm:$0xff] }
0x143e   :  { %3794 = vmatpush3.msra.mxu0 %v3381_v10 }
0x143f   :  { %3795 = vmatprep.subr.mxu0 %v3380_v61 }
0x1440   :  { %3796 = vmatpush3.msra.mxu0 %v3380_v61 }
0x1441   :  { %2722 = vadd.xlane.f32.xlu0 %v2721_v13  ;;  %v3379_v13 = vld [vmem:[%s4912_s13 + $0xd0] sm:$0xff] }
0x1442   :  { %3797 = vmatprep.subr.mxu0 %v3379_v13 }
0x1443   :  { %3798 = vmatpush3.msra.mxu0 %v3379_v13 }
0x14ba   :  { %v2717_v14 = vpop.xlane.xlu1 %2716 }
0x14bb   :  { %v2725_v51 = vmul.f32 0.03125, %v2717_v14  ;;  %v3378_v14 = vld [vmem:[%s4912_s13 + $0xc8] sm:$0xff] }
0x14bc   :  { %v2714_v11 = vpop.xlane.xlu0 %2713  ;;  %3799 = vmatprep.subr.mxu0 %v3378_v14 }
0x14bd   :  { %v2729_v54 = vsub.f32 %v4760_v2, %v2725_v51  ;;  %v2724_v15 = vmul.f32 0.03125, %v2714_v11  ;;  %3800 = vmatpush3.msra.mxu0 %v3378_v14  ;;  %v3377_v51 = vld [vmem:[%s4912_s13 + $0xc0] sm:$0xff]  ;;  %v3376_v11 = vld [vmem:[%s4912_s13 + $0xb8] sm:$0xff] }
0x14be   :  { %3801 = vmatprep.subr.mxu0 %v3377_v51 }
0x14bf   :  { %v2728_v16 = vsub.f32 %v4763_v33, %v2724_v15  ;;  %v2733_v17 = vmul.f32 %v2729_v54, %v2729_v54  ;;  %3802 = vmatpush3.msra.mxu0 %v3377_v51  ;;  %v3374_v15 = vld [vmem:[%s4912_s13 + $0xa8] sm:$0xff] }
0x14c0   :  { %3803 = vmatprep.subr.mxu0 %v3376_v11 }
0x14c1   :  { %v2739_v31 = vsel %vm108_vm1, %v2733_v17, 0.0  ;;  %v2732_v41 = vmul.f32 %v2728_v16, %v2728_v16  ;;  %3804 = vmatpush3.msra.mxu0 %v3376_v11  ;;  %v3372_v17 = vld [vmem:[%s4912_s13 + $0x98] sm:$0xff] }
0x14c2   :  { %2740 = vadd.xlane.f32.xlu1 %v2739_v31  ;;  %v3371_v31 = vld [vmem:[%s4912_s13 + $0x90] sm:$0xff] }
0x14c3   :  { %v2736_v21 = vsel %vm108_vm1, %v2732_v41, 0.0  ;;  %v3370_v41 = vld [vmem:[%s4912_s13 + $0x88] sm:$0xff] }
0x14c4   :  { %2737 = vadd.xlane.f32.xlu0 %v2736_v21  ;;  %v3369_v21 = vld [vmem:[%s4912_s13 + $0x80] sm:$0xff] }
0x14c6   :  { %v2720_v44 = vpop.xlane.xlu0 %2719 }
0x14c7   :  { %v2726_v22 = vmul.f32 0.03125, %v2720_v44  ;;  %v3364_v44 = vld [vmem:[%s4911_s12 + $0x1] ss:$0 sm:$0xff] }
0x14c9   :  { %v2730_v25 = vsub.f32 %v4770_v12, %v2726_v22 }
0x14ca   :  { %v2723_v60 = vpop.xlane.xlu0 %2722 }
0x14cb   :  { %v2727_v26 = vmul.f32 0.03125, %v2723_v60  ;;  %v2734_v27 = vmul.f32 %v2730_v25, %v2730_v25 }
0x14cd   :  { %v2731_v29 = vsub.f32 %v4773_v19, %v2727_v26  ;;  %v2742_v34 = vsel %vm108_vm1, %v2734_v27, 0.0 }
0x14ce   :  { %2743 = vadd.xlane.f32.xlu0 %v2742_v34 }
0x14cf   :  { %v2735_v35 = vmul.f32 %v2731_v29, %v2731_v29 }
0x14d1   :  { %v2745_v5 = vsel %vm108_vm1, %v2735_v35, 0.0 }
0x14d2   :  { %2746 = vadd.xlane.f32.xlu1 %v2745_v5 }
0x154b   :  { %v2741_v23 = vpop.xlane.xlu1 %2740 }
0x154c   :  { %v2749_v18 = vmul.f32 0.03125, %v2741_v23 }
0x154d   :  { %v2738_v24 = vpop.xlane.xlu0 %2737 }
0x154e   :  { %v2753_v36 = vadd.f32 1e-05, %v2749_v18  ;;  %v2748_v37 = vmul.f32 0.03125, %v2738_v24 }
0x1550   :  { %3946 = vrsqrt.f32 %v2753_v36  ;;  %v2752_v1 = vadd.f32 1e-05, %v2748_v37 }
0x1552   :  { %3948 = vrsqrt.f32 %v2752_v1 }
0x1557   :  { %v2744_v38 = vpop.xlane.xlu0 %2743 }
0x1558   :  { %v2750_v40 = vmul.f32 0.03125, %v2744_v38 }
0x155a   :  { %v2754_v42 = vadd.f32 1e-05, %v2750_v40 }
0x155b   :  { %v2747_v45 = vpop.xlane.xlu1 %2746 }
0x155c   :  { %3950 = vrsqrt.f32 %v2754_v42  ;;  %v2751_v46 = vmul.f32 0.03125, %v2747_v45 }
0x155d   :  { %v3947_v47 = vpop.eup %3946 }
0x155e   :  { %v2761_v48 = vmul.f32 %v3947_v47, %v2729_v54  ;;  %v2755_v49 = vadd.f32 1e-05, %v2751_v46  ;;  %v3375_v54 = vld [vmem:[%s4912_s13 + $0xb0] sm:$0xff] }
0x155f   :  { %v3949_v52 = vpop.eup %3948  ;;  %3805 = vmatprep.subr.mxu0 %v3375_v54 }
0x1560   :  { %3952 = vrsqrt.f32 %v2755_v49  ;;  %v2760_v53 = vmul.f32 %v3949_v52, %v2728_v16  ;;  %v2771_v56 = vmul.f32 %v3357_v50, %v2761_v48  ;;  %3806 = vmatpush3.msra.mxu0 %v3375_v54  ;;  %v3373_v16 = vld [vmem:[%s4912_s13 + $0xa0] sm:$0xff] }
0x1561   :  { %3807 = vmatprep.subr.mxu0 %v3374_v15 }
0x1562   :  { %v2770_v62 = vmul.f32 %v3357_v50, %v2760_v53  ;;  %v2781_v63 = vadd.f32 %v3358_v58, %v2771_v56  ;;  %3808 = vmatpush3.msra.mxu0 %v3374_v15 }
0x1563   :  { %3809 = vmatprep.subr.mxu0 %v3373_v16 }
0x1564   :  { %v2780_v30 = vadd.f32 %v3358_v58, %v2770_v62  ;;  %3810 = vmatpush3.msra.mxu0 %v3373_v16 }
0x1565   :  { %3811 = vmatprep.subr.mxu0 %v3372_v17 }
0x1566   :  { %3781 = vmatprep.mubr.msk.f32.mxu1 %vm108_vm1, %v2780_v30  ;;  %3812 = vmatpush3.msra.mxu0 %v3372_v17 }
0x1567   :  { %3782 = vmatmul.mubr.msk.f32.vlgmr.msra.gmra.mxu1 %vm108_vm1, %v2781_v63  ;;  %3813 = vmatprep.subr.mxu0 %v3371_v31 }
0x1568   :  { %3814 = vmatpush3.msra.mxu0 %v3371_v31 }
0x1569   :  { %v3951_v39 = vpop.eup %3950  ;;  %3815 = vmatprep.subr.mxu0 %v3370_v41 }
0x156a   :  { %v2762_v55 = vmul.f32 %v3951_v39, %v2730_v25  ;;  %3816 = vmatpush3.msra.mxu0 %v3370_v41 }
0x156b   :  { %3817 = vmatprep.subr.mxu0 %v3369_v21 }
0x156c   :  { %v2772_v57 = vmul.f32 %v3357_v50, %v2762_v55  ;;  %3818 = vmatpush3.msra.mxu0 %v3369_v21 }
0x156d   :  { %v3953_v0 = vpop.eup %3952 }
0x156e   :  { %v2782_v43 = vadd.f32 %v3358_v58, %v2772_v57  ;;  %v2763_v3 = vmul.f32 %v3953_v0, %v2731_v29 }
0x1570   :  { %3784 = vmatprep.mubr.msk.f32.mxu1 %vm108_vm1, %v2782_v43  ;;  %v2773_v59 = vmul.f32 %v3357_v50, %v2763_v3 }
0x1572   :  { %v2783_v4 = vadd.f32 %v3358_v58, %v2773_v59 }
0x1574   :  { %3785 = vmatmul.mubr.msk.f32.gmra.mxu1 %vm108_vm1, %v2783_v4 }
0x1627   :  { %v3783_v22 = vpop.f32.mrf.mxu1 }
0x1628   :  { %v2881_v25 = vadd.f32 %v3783_v22, %v3364_v44 }
0x1629   :  { %v2875_v60 = vpop.f32.mrf.mxu1 }
0x162a   :  { %v2895_v26 = vmul.f32 %v2881_v25, %v2881_v25  ;;  %v2876_v27 = vadd.f32 %v3364_v44, %v2875_v60 }
0x162c   :  { %v2899_v29 = vmul.f32 %v2895_v26, %v2881_v25  ;;  %v2894_v34 = vmul.f32 %v2876_v27, %v2876_v27 }
0x162e   :  { %v2903_v35 = vmul.f32 0.044715, %v2899_v29  ;;  %v2898_v5 = vmul.f32 %v2894_v34, %v2876_v27 }
0x1630   :  { %v2907_v32 = vadd.f32 %v2903_v35, %v2881_v25  ;;  %v2902_v9 = vmul.f32 0.044715, %v2898_v5 }
0x1632   :  { %v2911_v28 = vmul.f32 0.7978846, %v2907_v32  ;;  %v2906_v20 = vadd.f32 %v2902_v9, %v2876_v27 }
0x1634   :  { %3954 = vtanh.f32 %v2911_v28  ;;  %v2910_v23 = vmul.f32 0.7978846, %v2906_v20  ;;  %v3786_v18 = vpop.f32.mrf.mxu1 }
0x1635   :  { %v2891_v24 = vadd.f32 %v3786_v18, %v3364_v44 }
0x1636   :  { %3956 = vtanh.f32 %v2910_v23  ;;  %v2885_v36 = vpop.f32.mrf.mxu1 }
0x1637   :  { %v2897_v37 = vmul.f32 %v2891_v24, %v2891_v24  ;;  %v2886_v1 = vadd.f32 %v3364_v44, %v2885_v36 }
0x1639   :  { %v2901_v38 = vmul.f32 %v2897_v37, %v2891_v24  ;;  %v2896_v40 = vmul.f32 %v2886_v1, %v2886_v1  ;;  %v3124_v37 = vld [vmem:[#allocation2 + $0x18] sm:$0xff] }
0x163a   :  { %3825 = vmatprep.subr.mxu1 %v3124_v37 }
0x163b   :  { %v2905_v42 = vmul.f32 0.044715, %v2901_v38  ;;  %v2900_v45 = vmul.f32 %v2896_v40, %v2886_v1  ;;  %3826 = vmatpush3.msra.mxu1 %v3124_v37  ;;  %v3122_v38 = vld [vmem:[#allocation2 + $0x8] sm:$0xff]  ;;  %v3121_v40 = vld [vmem:[#allocation2] sm:$0xff] }
0x163d   :  { %v2909_v46 = vadd.f32 %v2905_v42, %v2891_v24  ;;  %v2904_v47 = vmul.f32 0.044715, %v2900_v45 }
0x163f   :  { %v2913_v48 = vmul.f32 0.7978846, %v2909_v46  ;;  %v2908_v49 = vadd.f32 %v2904_v47, %v2886_v1 }
0x1641   :  { %v3955_v50 = vpop.eup %3954  ;;  %3958 = vtanh.f32 %v2913_v48  ;;  %v2912_v52 = vmul.f32 0.7978846, %v2908_v49 }
0x1642   :  { %v2919_v53 = vadd.f32 1.0, %v3955_v50 }
0x1643   :  { %v3957_v56 = vpop.eup %3956  ;;  %3960 = vtanh.f32 %v2912_v52 }
0x1644   :  { %v2918_v58 = vadd.f32 1.0, %v3957_v56  ;;  %v2923_v62 = vmul.f32 0.5, %v2919_v53 }
0x1646   :  { %v2922_v30 = vmul.f32 0.5, %v2918_v58  ;;  %v2927_v39 = vmul.f32 %v2923_v62, %v2881_v25 }
0x1648   :  { %v2926_v63 = vmul.f32 %v2922_v30, %v2876_v27 }
0x164a   :  { %3819 = vmatprep.mubr.f32.mxu0 %v2926_v63 }
0x164b   :  { %3820 = vmatmul.mubr.f32.vlgmr.msra.gmra.mxu0 %v2927_v39  ;;  %v3387_v39 = vld [vmem:[%s4914_s15] ss:$0 sm:$0xff]  ;;  %s4049_s15 = smov [#allocation6]  }
0x164e   :  { %v3959_v55 = vpop.eup %3958 }
0x164f   :  { %v2921_v57 = vadd.f32 1.0, %v3959_v55 }
0x1650   :  { %v3961_v0 = vpop.eup %3960 }
0x1651   :  { %v2920_v43 = vadd.f32 1.0, %v3961_v0  ;;  %v2925_v3 = vmul.f32 0.5, %v2921_v57 }
0x1653   :  { %v2924_v59 = vmul.f32 0.5, %v2920_v43  ;;  %v2929_v6 = vmul.f32 %v2925_v3, %v2891_v24  ;;  %v3388_v43 = vld [vmem:[%s4915_s16] ss:$0 sm:$0xff]  ;;  %s3243_s16 = sshll.u32 %s4049_s15, 4  ;;  %s3244_s16 = int_to_ptr.vmem [resolvable:$true] %s3243_s16 }
0x1654   :  { %s3994_s24 = scalar_lea.vmem %s3244_s16, 512  ;;  %p3999_p6 = scmp.lt.s32.totalorder %s3244_s16, %s3244_s16 }
0x1655   :  { %v2928_v4 = vmul.f32 %v2924_v59, %v2886_v1  ;;  %v3123_v1 = vld [vmem:[#allocation2 + $0x10] sm:$0xff]  ;;  %p3995_p5 = scmp.ne.s32.totalorder %s3244_s16, %s3994_s24  ;;  %p4000_p7 = scmp.lt.s32.totalorder %s3994_s24, %s3994_s24 }
0x1656   :  { %3827 = vmatprep.subr.mxu1 %v3123_v1 }
0x1657   :  { %3822 = vmatprep.mubr.f32.mxu0 %v2928_v4  ;;  %3828 = vmatpush3.msra.mxu1 %v3123_v1  ;;  %p4001_p8 = por %p4000_p7, %p3999_p6 }
0x1658   :  { %3823 = vmatmul.mubr.f32.gmra.mxu0 %v2929_v6  ;;  %3829 = vmatprep.subr.mxu1 %v3122_v38 }
0x1659   :  { %3830 = vmatpush3.msra.mxu1 %v3122_v38  ;;  %p4002_p9 = pnand %p4001_p8, %p3995_p5 }
0x165a   :  { %3831 = vmatprep.subr.mxu1 %v3121_v40 }
0x165b   :  { %3832 = vmatpush3.msra.mxu1 %v3121_v40 }
0x170b   :  { %v3821_v8 = vpop.f32.mrf.mxu0 }
0x170c   :  { %v3027_v10 = vadd.f32 %v3821_v8, %v3386_v7 }
0x170d   :  { %v3021_v61 = vpop.f32.mrf.mxu0 }
0x170e   :  { %v3041_v13 = vadd.f32 %v3027_v10, %v4760_v2  ;;  %v3022_v14 = vadd.f32 %v3386_v7, %v3021_v61 }
0x1710   :  { %3045 = vst.msk [vmem:[#allocation6 + $0x10] sm:$0xff] %vm108_vm1, %v3041_v13  ;;  %v3040_v51 = vadd.f32 %v3022_v14, %v4763_v33  ;;  %v3052_v11 = vsel %vm108_vm1, %v3041_v13, 0.0 }
0x1711   :  { %3053 = vadd.xlane.f32.xlu1 %v3052_v11 }
0x1712   :  { %v3049_v54 = vsel %vm108_vm1, %v3040_v51, 0.0 }
0x1713   :  { %3050 = vadd.xlane.f32.xlu0 %v3049_v54 }
0x1718   :  { %v3824_v15 = vpop.f32.mrf.mxu0 }
0x1719   :  { %v3037_v16 = vadd.f32 %v3824_v15, %v3386_v7 }
0x171a   :  { %v3031_v17 = vpop.f32.mrf.mxu0 }
0x171b   :  { %v3043_v31 = vadd.f32 %v3037_v16, %v4773_v19  ;;  %v3032_v41 = vadd.f32 %v3386_v7, %v3031_v17 }
0x171d   :  { %3046 = vst.msk [vmem:[#allocation6 + $0x18] sm:$0xff] %vm108_vm1, %v3043_v31  ;;  %v3042_v2 = vadd.f32 %v3032_v41, %v4770_v12  ;;  %v3058_v21 = vsel %vm108_vm1, %v3043_v31, 0.0 }
0x171e   :  { %3059 = vadd.xlane.f32.xlu1 %v3058_v21 }
0x171f   :  { %v3055_v33 = vsel %vm108_vm1, %v3042_v2, 0.0 }
0x1720   :  { %3056 = vadd.xlane.f32.xlu0 %v3055_v33 }
0x179a   :  { %v3054_v44 = vpop.xlane.xlu1 %3053 }
0x179b   :  { %v3062_v22 = vmul.f32 0.03125, %v3054_v44 }
0x179c   :  { %v3051_v25 = vpop.xlane.xlu0 %3050 }
0x179d   :  { %v3066_v60 = vsub.f32 %v3041_v13, %v3062_v22  ;;  %v3061_v26 = vmul.f32 0.03125, %v3051_v25 }
0x179f   :  { %v3065_v27 = vsub.f32 %v3040_v51, %v3061_v26  ;;  %v3070_v29 = vmul.f32 %v3066_v60, %v3066_v60 }
0x17a1   :  { %v3076_v19 = vsel %vm108_vm1, %v3070_v29, 0.0  ;;  %v3069_v34 = vmul.f32 %v3065_v27, %v3065_v27 }
0x17a2   :  { %3077 = vadd.xlane.f32.xlu1 %v3076_v19 }
0x17a3   :  { %v3073_v35 = vsel %vm108_vm1, %v3069_v34, 0.0 }
0x17a4   :  { %3074 = vadd.xlane.f32.xlu0 %v3073_v35 }
0x17a7   :  { %v3060_v12 = vpop.xlane.xlu1 %3059 }
0x17a8   :  { %v3064_v5 = vmul.f32 0.03125, %v3060_v12 }
0x17a9   :  { %v3057_v32 = vpop.xlane.xlu0 %3056 }
0x17aa   :  { %v3068_v9 = vsub.f32 %v3043_v31, %v3064_v5  ;;  %v3063_v28 = vmul.f32 0.03125, %v3057_v32 }
0x17ac   :  { %v3067_v20 = vsub.f32 %v3042_v2, %v3063_v28  ;;  %v3072_v23 = vmul.f32 %v3068_v9, %v3068_v9 }
0x17ae   :  { %v3082_v18 = vsel %vm108_vm1, %v3072_v23, 0.0  ;;  %v3071_v24 = vmul.f32 %v3067_v20, %v3067_v20 }
0x17af   :  { %3083 = vadd.xlane.f32.xlu1 %v3082_v18 }
0x17b0   :  { %v3079_v36 = vsel %vm108_vm1, %v3071_v24, 0.0 }
0x17b1   :  { %3080 = vadd.xlane.f32.xlu0 %v3079_v36 }
0x182b   :  { %v3078_v42 = vpop.xlane.xlu1 %3077 }
0x182c   :  { %v3086_v45 = vmul.f32 0.03125, %v3078_v42 }
0x182d   :  { %v3075_v46 = vpop.xlane.xlu0 %3074 }
0x182e   :  { %v3090_v47 = vadd.f32 1e-05, %v3086_v45  ;;  %v3085_v48 = vmul.f32 0.03125, %v3075_v46 }
0x1830   :  { %3962 = vrsqrt.f32 %v3090_v47  ;;  %v3089_v49 = vadd.f32 1e-05, %v3085_v48 }
0x1832   :  { %3964 = vrsqrt.f32 %v3089_v49 }
0x1838   :  { %v3084_v50 = vpop.xlane.xlu1 %3083 }
0x1839   :  { %v3088_v52 = vmul.f32 0.03125, %v3084_v50 }
0x183a   :  { %v3081_v53 = vpop.xlane.xlu0 %3080 }
0x183b   :  { %v3092_v56 = vadd.f32 1e-05, %v3088_v52  ;;  %v3087_v58 = vmul.f32 0.03125, %v3081_v53 }
0x183d   :  { %v3963_v62 = vpop.eup %3962  ;;  %3966 = vrsqrt.f32 %v3092_v56  ;;  %v3091_v30 = vadd.f32 1e-05, %v3087_v58 }
0x183e   :  { %v3098_v63 = vmul.f32 %v3963_v62, %v3066_v60 }
0x183f   :  { %v3965_v55 = vpop.eup %3964  ;;  %3968 = vrsqrt.f32 %v3091_v30 }
0x1840   :  { %v3097_v57 = vmul.f32 %v3965_v55, %v3065_v27  ;;  %v3108_v0 = vmul.f32 %v3387_v39, %v3098_v63 }
0x1842   :  { %v3107_v3 = vmul.f32 %v3387_v39, %v3097_v57  ;;  %v3118_v4 = vadd.f32 %v3388_v43, %v3108_v0 }
0x1844   :  { %v3117_v59 = vadd.f32 %v3388_v43, %v3107_v3 }
0x1846   :  { %3833 = vmatprep.mubr.msk.f32.mxu1 %vm108_vm1, %v3117_v59 }
0x1847   :  { %3834 = vmatmul.mubr.msk.f32.vlgmr.msra.gmra.mxu1 %vm108_vm1, %v3118_v4 }
0x184a   :  { %v3967_v6 = vpop.eup %3966 }
0x184b   :  { %v3100_v7 = vmul.f32 %v3967_v6, %v3068_v9 }
0x184c   :  { %v3969_v8 = vpop.eup %3968 }
0x184d   :  { %v3099_v10 = vmul.f32 %v3969_v8, %v3067_v20  ;;  %v3110_v61 = vmul.f32 %v3387_v39, %v3100_v7 }
0x184f   :  { %v3109_v13 = vmul.f32 %v3387_v39, %v3099_v10  ;;  %v3120_v51 = vadd.f32 %v3388_v43, %v3110_v61 }
0x1851   :  { %v3119_v14 = vadd.f32 %v3388_v43, %v3109_v13 }
0x1853   :  { %3836 = vmatprep.mubr.msk.f32.mxu1 %vm108_vm1, %v3119_v14 }
0x1854   :  { %3837 = vmatmul.mubr.msk.f32.gmra.mxu1 %vm108_vm1, %v3120_v51 }
0x1855   :  { %4005 = shalt.err (!%p4002_p9)
}
0x1856   :  { %s4940_s6 = smov 8   ;;  %s4941_s28 = smov 128  }
0x1857   :  { %3249 = dma.vmem_to_hbm [thread:$0]  %s3244_s16, 512, %s4918_s19, [#allocation7], %s4941_s28, %s4941_s28, %s4940_s6  }
0x1858   :  { %s4050_s23 = smov [#allocation5]  }
0x1859   :  { %s3231_s3 = sshll.u32 %s4050_s23, 4  ;;  %s3232_s3 = int_to_ptr.vmem [resolvable:$true] %s3231_s3 }
0x185a   :  { %s4014_s11 = scalar_lea.vmem %s3232_s3, 512  ;;  %p4019_p11 = scmp.lt.s32.totalorder %s3232_s3, %s3232_s3 }
0x185b   :  { %p4015_p10 = scmp.ne.s32.totalorder %s3232_s3, %s4014_s11  ;;  %p4020_p12 = scmp.lt.s32.totalorder %s4014_s11, %s4014_s11 }
0x185d   :  { %p4021_p13 = por %p4020_p12, %p4019_p11 }
0x185f   :  { %p4022_p0 = pnand %p4021_p13, %p4015_p10 }
0x1907   :  { %v3835_v11 = vpop.f32.mrf.mxu1 }
0x1908   :  { %3223 = vst [vmem:[#allocation5 + $0x8] sm:$0xff] %v3835_v11 }
0x1909   :  { %v3203_v54 = vpop.f32.mrf.mxu1 }
0x190a   :  { %3222 = vst [vmem:[#allocation5] sm:$0xff] %v3203_v54 }
0x1914   :  { %v3838_v15 = vpop.f32.mrf.mxu1 }
0x1915   :  { %3225 = vst [vmem:[#allocation5 + $0x18] sm:$0xff] %v3838_v15 }
0x1916   :  { %v3213_v16 = vpop.f32.mrf.mxu1 }
0x1917   :  { %3224 = vst [vmem:[#allocation5 + $0x10] sm:$0xff] %v3213_v16 }
0x1918   :  { %4025 = shalt.err (!%p4022_p0)
}
0x1919   :  { %3237 = dma.vmem_to_hbm [thread:$0]  %s3232_s3, 512, %s4917_s18, [#allocation4], %s4941_s28, %s4941_s28, %s4940_s6  }
0x191a   :  { %4036 = dma.done.wait [#allocation4], 512  }
0x191b   :  { %4037 = vsyncadd [#allocation4], 4294966784 }
0x191c   :  { %4038 = dma.done.wait [#allocation7], 512  }
0x191d   :  { %4039 = vsyncadd [#allocation7], 4294966784 }
0x191e   :  { %3256 = vsyncpa [#allocation3], 1 }
0x191f   :  { %3257 = vsyncpa [#allocation4], 1 }
0x1920   :  { %3258 = vsyncpa [#allocation7], 1 }

</bundles_post_ra>
